<compile_context>
chip_gen: v5e
topology: v5e:2x2
jax: 0.10.0
libtpu: 0.0.40
codegen_flags: <defaults>
</compile_context>

<pallas_src>
import jax
import jax.numpy as jnp
from jax import lax
from jax.experimental import pallas as pl
from jax.experimental.pallas import tpu as pltpu

# ---- small synthetic config (consistent with SiglipVisionConfig fields) ----
HIDDEN = 128          # hidden_size        (lane-dense: 1 x 128)
INTERMEDIATE = 256    # intermediate_size  (lane-dense: 2 x 128)
NUM_LAYERS = 2        # num_hidden_layer
NUM_HEADS = 4         # num_attemtion_heads
HEAD_DIM = HIDDEN // NUM_HEADS
NUM_CHANNELS = 3      # num_channel
IMAGE_SIZE = 32       # image_size
PATCH_SIZE = 8        # patch_size
EPS = 1e-6            # layer_norm_eps
N_PATCHES = (IMAGE_SIZE // PATCH_SIZE) ** 2
CPP = NUM_CHANNELS * PATCH_SIZE * PATCH_SIZE


# ----------------------------------------------------------------------------
# In-kernel helpers (f32 elementwise math -- also correct on v5e, no bf16 VPU)
# ----------------------------------------------------------------------------
def _layernorm(x, gamma, beta):
    mu = jnp.mean(x, axis=-1, keepdims=True)
    var = jnp.mean(jnp.square(x - mu), axis=-1, keepdims=True)
    return (x - mu) * lax.rsqrt(var + EPS) * gamma + beta


def _gelu_tanh(x):
    # "gelu_pytorch_tanh" activation used by the Siglip MLP
    c = 0.7978845608028654  # sqrt(2/pi)
    return 0.5 * x * (1.0 + jnp.tanh(c * (x + 0.044715 * x * x * x)))


# ----------------------------------------------------------------------------
# Kernel: one (image, layer) grid step
# ----------------------------------------------------------------------------
def _siglip_layer_kernel(
    patches_ref,             # (N, CPP)      bf16   -- this image's patches
    pe_w_ref, pe_b_ref,      # (CPP, D) bf16, (1, D) f32
    pos_ref,                 # (N, D)        f32
    attn_w_ref, attn_b_ref,  # (4, D, D) bf16, (4, 1, D) f32   [q, k, v, o]
    ln_g_ref, ln_b_ref,      # (2, 1, D)     f32                [ln1, ln2]
    mlp_w1_ref, mlp_b1_ref,  # (D, I) bf16, (1, I) f32
    mlp_w2_ref, mlp_b2_ref,  # (I, D) bf16, (1, D) f32
    post_g_ref, post_b_ref,  # (1, D)        f32
    o_ref,                   # (N, D)        f32   -- output for this image
    x_ref,                   # scratch VMEM (N, D) f32 -- hidden state carry
    ctx_ref,                 # scratch VMEM (N, D) f32 -- per-head context
):
    layer = pl.program_id(1)

    # ---- patch embedding (conv-as-matmul) + bias + positional embedding ----
    @pl.when(layer == 0)
    def _():
        emb = jnp.dot(patches_ref[...], pe_w_ref[...],
                      preferred_element_type=jnp.float32)
        x_ref[...] = emb + pe_b_ref[...] + pos_ref[...]

    x = x_ref[...]                                      # (N, D) f32

    # ---------------------------- self-attention ----------------------------
    h = _layernorm(x, ln_g_ref[0], ln_b_ref[0]).astype(jnp.bfloat16)
    # 1/sqrt(head_dim) is already folded into wq / bq in the wrapper.
    q = jnp.dot(h, attn_w_ref[0], preferred_element_type=jnp.float32) + attn_b_ref[0]
    k = jnp.dot(h, attn_w_ref[1], preferred_element_type=jnp.float32) + attn_b_ref[1]
    v = jnp.dot(h, attn_w_ref[2], preferred_element_type=jnp.float32) + attn_b_ref[2]
    q = q.astype(jnp.bfloat16)
    k = k.astype(jnp.bfloat16)
    v = v.astype(jnp.bfloat16)

    for hh in range(NUM_HEADS):                         # static head loop
        sl = slice(hh * HEAD_DIM, (hh + 1) * HEAD_DIM)
        # q @ k^T: contract the head_dim of both operands (no transpose op)
        scores = lax.dot_general(
            q[:, sl], k[:, sl], (((1,), (1,)), ((), ())),
            preferred_element_type=jnp.float32)         # (N, N) f32
        m = jnp.max(scores, axis=-1, keepdims=True)
        p = jnp.exp(scores - m)
        denom = jnp.sum(p, axis=-1, keepdims=True)
        p = p * pl.reciprocal(denom, approx=True)       # divide -> EUP slot
        # write head context in place (no concatenate of sub-lane slices)
        ctx_ref[:, sl] = jnp.dot(p.astype(jnp.bfloat16), v[:, sl],
                                 preferred_element_type=jnp.float32)

    # single K=HIDDEN output projection over the concatenated head contexts
    attn_out = (jnp.dot(ctx_ref[...].astype(jnp.bfloat16), attn_w_ref[3],
                        preferred_element_type=jnp.float32) + attn_b_ref[3])
    x = x + attn_out

    # --------------------------------- MLP ----------------------------------
    h = _layernorm(x, ln_g_ref[1], ln_b_ref[1]).astype(jnp.bfloat16)
    h1 = (jnp.dot(h, mlp_w1_ref[...], preferred_element_type=jnp.float32)
          + mlp_b1_ref[...])
    h1 = _gelu_tanh(h1)                                 # f32
    h2 = (jnp.dot(h1.astype(jnp.bfloat16), mlp_w2_ref[...],
                  preferred_element_type=jnp.float32) + mlp_b2_ref[...])
    x = x + h2

    x_ref[...] = x

    # ---- final LayerNorm + store only on the last layer step ----
    @pl.when(layer == pl.num_programs(1) - 1)
    def _():
        o_ref[...] = _layernorm(x, post_g_ref[...], post_b_ref[...])


# ----------------------------------------------------------------------------
# Wrapper: patch extraction + weight packing + single pallas_call
# ----------------------------------------------------------------------------
def siglip_vision_transformer(pixel_values, params):
    """pixel_values: [B, C, H, W] (NCHW). Returns [B, N_patches, HIDDEN] f32."""
    B, C, H, W = pixel_values.shape
    P = PATCH_SIZE
    hn, wn = H // P, W // P
    N = hn * wn
    D, I, L = HIDDEN, INTERMEDIATE, NUM_LAYERS
    cpp = C * P * P

    # Non-overlapping patches; feature order (c, ph, pw) matches
    # Conv2d(kernel=P, stride=P, padding='valid') contraction order.
    patches = pixel_values.reshape(B, C, hn, P, wn, P)
    patches = patches.transpose(0, 2, 4, 1, 3, 5).reshape(B, N, cpp)
    patches = patches.astype(jnp.bfloat16)

    pe_w = params["conv_w"].reshape(D, cpp).T.astype(jnp.bfloat16)   # [CPP, D]
    pe_b = params["conv_b"].reshape(1, D)
    pos = params["pos_emb"]                                          # [N, D]

    layers = params["layers"]
    scale = HEAD_DIM ** -0.5
    # Pack per-layer weights along a leading layer axis; fold softmax scale
    # into the q projection; matmul operands in bf16, biases/LN params in f32.
    attn_w = jnp.stack([jnp.stack([p["wq"] * scale, p["wk"], p["wv"], p["wo"]])
                        for p in layers]).astype(jnp.bfloat16)            # [L,4,D,D]
    attn_b = jnp.stack([jnp.stack([p["bq"] * scale, p["bk"], p["bv"], p["bo"]])
                        for p in layers])[:, :, None, :]                  # [L,4,1,D]
    ln_g = jnp.stack([jnp.stack([p["ln1_g"], p["ln2_g"]]) for p in layers])[:, :, None, :]
    ln_b = jnp.stack([jnp.stack([p["ln1_b"], p["ln2_b"]]) for p in layers])[:, :, None, :]
    mlp_w1 = jnp.stack([p["w1"] for p in layers]).astype(jnp.bfloat16)    # [L,D,I]
    mlp_b1 = jnp.stack([p["b1"] for p in layers])[:, None, :]             # [L,1,I]
    mlp_w2 = jnp.stack([p["w2"] for p in layers]).astype(jnp.bfloat16)    # [L,I,D]
    mlp_b2 = jnp.stack([p["b2"] for p in layers])[:, None, :]             # [L,1,D]

    post_g = params["post_ln_g"].reshape(1, D)
    post_b = params["post_ln_b"].reshape(1, D)

    in_specs = [
        pl.BlockSpec((None, N, cpp), lambda b, l: (b, 0, 0)),      # patches
        pl.BlockSpec((cpp, D), lambda b, l: (0, 0)),               # pe_w
        pl.BlockSpec((1, D), lambda b, l: (0, 0)),                 # pe_b
        pl.BlockSpec((N, D), lambda b, l: (0, 0)),                 # pos
        pl.BlockSpec((None, 4, D, D), lambda b, l: (l, 0, 0, 0)),  # attn_w (streamed)
        pl.BlockSpec((None, 4, 1, D), lambda b, l: (l, 0, 0, 0)),  # attn_b
        pl.BlockSpec((None, 2, 1, D), lambda b, l: (l, 0, 0, 0)),  # ln_g
        pl.BlockSpec((None, 2, 1, D), lambda b, l: (l, 0, 0, 0)),  # ln_b
        pl.BlockSpec((None, D, I), lambda b, l: (l, 0, 0)),        # mlp_w1 (streamed)
        pl.BlockSpec((None, 1, I), lambda b, l: (l, 0, 0)),        # mlp_b1
        pl.BlockSpec((None, I, D), lambda b, l: (l, 0, 0)),        # mlp_w2 (streamed)
        pl.BlockSpec((None, 1, D), lambda b, l: (l, 0, 0)),        # mlp_b2
        pl.BlockSpec((1, D), lambda b, l: (0, 0)),                 # post_g
        pl.BlockSpec((1, D), lambda b, l: (0, 0)),                 # post_b
    ]
    out_specs = pl.BlockSpec((None, N, D), lambda b, l: (b, 0, 0))

    operands = (patches, pe_w, pe_b, pos, attn_w, attn_b, ln_g, ln_b,
                mlp_w1, mlp_b1, mlp_w2, mlp_b2, post_g, post_b)

    # Advisory cost estimate so XLA schedules surrounding ops around the kernel.
    flops = int(B * (2 * N * cpp * D
                     + L * (8 * N * D * D + 4 * N * N * D + 4 * N * D * I)))
    transcendentals = int(B * L * (NUM_HEADS * N * N + N * I))
    bytes_accessed = int(sum(a.size * a.dtype.itemsize for a in operands)
                         + B * N * D * 4)

    out = pl.pallas_call(
        _siglip_layer_kernel,
        out_shape=jax.ShapeDtypeStruct((B, N, D), jnp.float32),
        grid_spec=pltpu.PrefetchScalarGridSpec(
            num_scalar_prefetch=0,
            grid=(B, L),                         # batch (parallel), layer (arbitrary)
            in_specs=in_specs,
            out_specs=out_specs,
            scratch_shapes=[
                pltpu.VMEM((N, D), jnp.float32),  # hidden-state carry
                pltpu.VMEM((N, D), jnp.float32),  # per-head context
            ],
        ),
        compiler_params=pltpu.CompilerParams(
            dimension_semantics=("parallel", "arbitrary"),
            # Sized for 2x streamed per-layer weights + activation blocks;
            # safe on v7x's 64 MiB physical VMEM as well as v5e/v6e.
            vmem_limit_bytes=32 * 1024 * 1024,
        ),
        cost_estimate=pl.CostEstimate(
            flops=flops, transcendentals=transcendentals,
            bytes_accessed=bytes_accessed),
    )(*operands)
    return out


# ----------------------------------------------------------------------------
# Deterministic parameter init
# ----------------------------------------------------------------------------
def init_params(key):
    def nrm(k, shape, scale=0.02):
        return scale * jax.random.normal(k, shape, jnp.float32)

    keys = jax.random.split(key, 4 + NUM_LAYERS)
    params = {
        "conv_w": nrm(keys[0], (HIDDEN, NUM_CHANNELS, PATCH_SIZE, PATCH_SIZE)),
        "conv_b": nrm(keys[1], (HIDDEN,)),
        "pos_emb": nrm(keys[2], (N_PATCHES, HIDDEN)),
        "post_ln_g": jnp.ones((HIDDEN,), jnp.float32),
        "post_ln_b": jnp.zeros((HIDDEN,), jnp.float32),
        "layers": [],
    }
    for li in range(NUM_LAYERS):
        lk = jax.random.split(keys[4 + li], 12)
        layer = {
            "ln1_g": jnp.ones((HIDDEN,), jnp.float32),
            "ln1_b": jnp.zeros((HIDDEN,), jnp.float32),
            # linear weights stored pre-transposed as [in, out] (x @ W)
            "wq": nrm(lk[0], (HIDDEN, HIDDEN)), "bq": nrm(lk[1], (HIDDEN,)),
            "wk": nrm(lk[2], (HIDDEN, HIDDEN)), "bk": nrm(lk[3], (HIDDEN,)),
            "wv": nrm(lk[4], (HIDDEN, HIDDEN)), "bv": nrm(lk[5], (HIDDEN,)),
            "wo": nrm(lk[6], (HIDDEN, HIDDEN)), "bo": nrm(lk[7], (HIDDEN,)),
            "ln2_g": jnp.ones((HIDDEN,), jnp.float32),
            "ln2_b": jnp.zeros((HIDDEN,), jnp.float32),
            "w1": nrm(lk[8], (HIDDEN, INTERMEDIATE)), "b1": nrm(lk[9], (INTERMEDIATE,)),
            "w2": nrm(lk[10], (INTERMEDIATE, HIDDEN)), "b2": nrm(lk[11], (HIDDEN,)),
        }
        params["layers"].append(layer)
    return params


# ----------------------------------------------------------------------------
# Pure-JAX f32 reference (per-batch attention, standard softmax)
# ----------------------------------------------------------------------------
def reference_forward(pixel_values, params):
    B, C, H, W = pixel_values.shape
    P = PATCH_SIZE
    hn, wn = H // P, W // P
    patches = pixel_values.reshape(B, C, hn, P, wn, P)
    patches = patches.transpose(0, 2, 4, 1, 3, 5).reshape(B, hn * wn, C * P * P)
    w2d = params["conv_w"].reshape(HIDDEN, C * P * P).T
    x = patches @ w2d + params["conv_b"] + params["pos_emb"][None]

    def ln(h, g, b):
        mu = h.mean(-1, keepdims=True)
        var = ((h - mu) ** 2).mean(-1, keepdims=True)
        return (h - mu) / jnp.sqrt(var + EPS) * g + b

    for p in params["layers"]:
        h = ln(x, p["ln1_g"], p["ln1_b"])
        q = h @ p["wq"] + p["bq"]
        k = h @ p["wk"] + p["bk"]
        v = h @ p["wv"] + p["bv"]
        B_, N_, _ = q.shape
        q = q.reshape(B_, N_, NUM_HEADS, HEAD_DIM).transpose(0, 2, 1, 3)
        k = k.reshape(B_, N_, NUM_HEADS, HEAD_DIM).transpose(0, 2, 1, 3)
        v = v.reshape(B_, N_, NUM_HEADS, HEAD_DIM).transpose(0, 2, 1, 3)
        s = jnp.einsum("bhqd,bhkd->bhqk", q, k) * (HEAD_DIM ** -0.5)
        a = jax.nn.softmax(s, axis=-1)
        ctx = jnp.einsum("bhqk,bhkd->bhqd", a, v)
        ctx = ctx.transpose(0, 2, 1, 3).reshape(B_, N_, HIDDEN)
        x = x + (ctx @ p["wo"] + p["bo"])
        h = ln(x, p["ln2_g"], p["ln2_b"])
        h = h @ p["w1"] + p["b1"]
        h = _gelu_tanh(h)
        x = x + (h @ p["w2"] + p["b2"])
    return ln(x, params["post_ln_g"], params["post_ln_b"])


if __name__ == "__main__":
    key = jax.random.PRNGKey(0)
    pkey, xkey = jax.random.split(key)
    params = init_params(pkey)
    pixel_values = jax.random.normal(
        xkey, (2, NUM_CHANNELS, IMAGE_SIZE, IMAGE_SIZE), jnp.float32
    )

    fwd = jax.jit(siglip_vision_transformer)
    out = fwd(pixel_values, params)
    out = jax.block_until_ready(out)
    assert out.shape == (2, N_PATCHES, HIDDEN), out.shape

    # correctness vs. f32 reference (kernel uses bf16 MXU operands -> ~1e-2 err)
    ref = reference_forward(pixel_values, params)
    err = float(jnp.abs(out - ref).max())
    assert jnp.allclose(out, ref, atol=2e-2, rtol=2e-2), err

    # no cross-batch leakage: a single-image run matches batch element 0
    out1 = jax.block_until_ready(fwd(pixel_values[:1], params))
    assert jnp.allclose(out1[0], out[0], atol=1e-5, rtol=1e-5)

    print("KERNEL_OK")
</pallas_src>

<mosaic_0001>
module attributes {stable_mosaic.version = 11 : i64} {
  func.func @_siglip_layer_kernel(%arg0: i32, %arg1: i32, %arg2: memref<1x16x192xbf16, #tpu.memory_space<vmem>>, %arg3: memref<192x128xbf16, #tpu.memory_space<vmem>>, %arg4: memref<1x128xf32, #tpu.memory_space<vmem>>, %arg5: memref<16x128xf32, #tpu.memory_space<vmem>>, %arg6: memref<1x4x128x128xbf16, #tpu.memory_space<vmem>>, %arg7: memref<1x4x1x128xf32, #tpu.memory_space<vmem>>, %arg8: memref<1x2x1x128xf32, #tpu.memory_space<vmem>>, %arg9: memref<1x2x1x128xf32, #tpu.memory_space<vmem>>, %arg10: memref<1x128x256xbf16, #tpu.memory_space<vmem>>, %arg11: memref<1x1x256xf32, #tpu.memory_space<vmem>>, %arg12: memref<1x256x128xbf16, #tpu.memory_space<vmem>>, %arg13: memref<1x1x128xf32, #tpu.memory_space<vmem>>, %arg14: memref<1x128xf32, #tpu.memory_space<vmem>>, %arg15: memref<1x128xf32, #tpu.memory_space<vmem>>, %arg16: memref<1x16x128xf32, #tpu.memory_space<vmem>>, %arg17: memref<16x128xf32, #tpu.memory_space<vmem>>, %arg18: memref<16x128xf32, #tpu.memory_space<vmem>>) attributes {dimension_semantics = [#tpu.dimension_semantics<parallel>, #tpu.dimension_semantics<arbitrary>], iteration_bounds = array<i64: 2, 2>, scalar_prefetch = 0 : i64, scratch_operands = 2 : i64, tpu.core_type = #tpu.core_type<tc>, window_params = [{transform_indices = @transform_0, window_bounds = array<i64: 1, 16, 192>}, {pipeline_mode = #tpu.pipeline_mode<synchronous>, transform_indices = @transform_1, window_bounds = array<i64: 192, 128>}, {pipeline_mode = #tpu.pipeline_mode<synchronous>, transform_indices = @transform_2, window_bounds = array<i64: 1, 128>}, {pipeline_mode = #tpu.pipeline_mode<synchronous>, transform_indices = @transform_3, window_bounds = array<i64: 16, 128>}, {transform_indices = @transform_4, window_bounds = array<i64: 1, 4, 128, 128>}, {transform_indices = @transform_5, window_bounds = array<i64: 1, 4, 1, 128>}, {transform_indices = @transform_6, window_bounds = array<i64: 1, 2, 1, 128>}, {transform_indices = @transform_7, window_bounds = array<i64: 1, 2, 1, 128>}, {transform_indices = @transform_8, window_bounds = array<i64: 1, 128, 256>}, {transform_indices = @transform_9, window_bounds = array<i64: 1, 1, 256>}, {transform_indices = @transform_10, window_bounds = array<i64: 1, 256, 128>}, {transform_indices = @transform_11, window_bounds = array<i64: 1, 1, 128>}, {pipeline_mode = #tpu.pipeline_mode<synchronous>, transform_indices = @transform_12, window_bounds = array<i64: 1, 128>}, {pipeline_mode = #tpu.pipeline_mode<synchronous>, transform_indices = @transform_13, window_bounds = array<i64: 1, 128>}, {transform_indices = @transform_14, window_bounds = array<i64: 1, 16, 128>}]} {
    %c0_i32 = arith.constant 0 : i32
    %0 = arith.cmpi eq, %arg1, %c0_i32 : i32
    %1 = arith.extui %0 : i1 to i32
    %c0_i32_0 = arith.constant 0 : i32
    %2 = arith.cmpi ne, %1, %c0_i32_0 : i32
    scf.if %2 {
      %c0_104 = arith.constant 0 : index
      %c0_105 = arith.constant 0 : index
      %c0_106 = arith.constant 0 : index
      %193 = vector.load %arg2[%c0_104, %c0_105, %c0_106] : memref<1x16x192xbf16, #tpu.memory_space<vmem>>, vector<1x16x192xbf16>
      %194 = vector.shape_cast %193 : vector<1x16x192xbf16> to vector<16x192xbf16>
      %c0_107 = arith.constant 0 : index
      %c0_108 = arith.constant 0 : index
      %195 = vector.load %arg3[%c0_107, %c0_108] : memref<192x128xbf16, #tpu.memory_space<vmem>>, vector<192x128xbf16>
      %cst_109 = arith.constant dense<0.000000e+00> : vector<16x128xf32>
      %196 = tpu.matmul %194, %195, %cst_109 {dimension_numbers = #tpu.dot_dimension_numbers<[1], [0], [0], [1], [0, 0, 1, 1], [], []>} : vector<16x192xbf16>, vector<192x128xbf16>, vector<16x128xf32> -> vector<16x128xf32>
      %c0_110 = arith.constant 0 : index
      %c0_111 = arith.constant 0 : index
      %197 = vector.load %arg4[%c0_110, %c0_111] : memref<1x128xf32, #tpu.memory_space<vmem>>, vector<1x128xf32>
      %198 = vector.broadcast %197 : vector<1x128xf32> to vector<16x128xf32>
      %199 = arith.addf %196, %198 : vector<16x128xf32>
      %c0_112 = arith.constant 0 : index
      %c0_113 = arith.constant 0 : index
      %200 = vector.load %arg5[%c0_112, %c0_113] : memref<16x128xf32, #tpu.memory_space<vmem>>, vector<16x128xf32>
      %201 = arith.addf %199, %200 : vector<16x128xf32>
      %c0_114 = arith.constant 0 : index
      %c0_115 = arith.constant 0 : index
      %202 = vector.load %arg17[%c0_114, %c0_115] : memref<16x128xf32, #tpu.memory_space<vmem>>, vector<16x128xf32>
      tpu.vector_store %arg17[%c0_114, %c0_115], %201 {strides = array<i32>} : memref<16x128xf32, #tpu.memory_space<vmem>>, vector<16x128xf32>,
    } else {
    }
    %c0 = arith.constant 0 : index
    %c0_1 = arith.constant 0 : index
    %3 = vector.load %arg17[%c0, %c0_1] : memref<16x128xf32, #tpu.memory_space<vmem>>, vector<16x128xf32>
    %c0_2 = arith.constant 0 : index
    %c0_3 = arith.constant 0 : index
    %c0_4 = arith.constant 0 : index
    %c0_5 = arith.constant 0 : index
    %4 = vector.load %arg8[%c0_2, %c0_3, %c0_4, %c0_5] : memref<1x2x1x128xf32, #tpu.memory_space<vmem>>, vector<1x1x1x128xf32>
    %5 = vector.shape_cast %4 : vector<1x1x1x128xf32> to vector<1x128xf32>
    %c0_6 = arith.constant 0 : index
    %c0_7 = arith.constant 0 : index
    %c0_8 = arith.constant 0 : index
    %c0_9 = arith.constant 0 : index
    %6 = vector.load %arg9[%c0_6, %c0_7, %c0_8, %c0_9] : memref<1x2x1x128xf32, #tpu.memory_space<vmem>>, vector<1x1x1x128xf32>
    %7 = vector.shape_cast %6 : vector<1x1x1x128xf32> to vector<1x128xf32>
    %cst = arith.constant dense<0.000000e+00> : vector<16xf32>
    %8 = vector.multi_reduction <add>, %3, %cst [1] : vector<16x128xf32> to vector<16xf32>
    %9 = vector.shape_cast %8 : vector<16xf32> to vector<16x1xf32>
    %cst_10 = arith.constant 1.280000e+02 : f32
    %10 = vector.broadcast %cst_10 : f32 to vector<16x1xf32>
    %11 = arith.divf %9, %10 : vector<16x1xf32>
    %12 = vector.broadcast %11 : vector<16x1xf32> to vector<16x128xf32>
    %13 = arith.subf %3, %12 : vector<16x128xf32>
    %14 = arith.mulf %13, %13 : vector<16x128xf32>
    %cst_11 = arith.constant dense<0.000000e+00> : vector<16xf32>
    %15 = vector.multi_reduction <add>, %14, %cst_11 [1] : vector<16x128xf32> to vector<16xf32>
    %16 = vector.shape_cast %15 : vector<16xf32> to vector<16x1xf32>
    %cst_12 = arith.constant 1.280000e+02 : f32
    %17 = vector.broadcast %cst_12 : f32 to vector<16x1xf32>
    %18 = arith.divf %16, %17 : vector<16x1xf32>
    %19 = vector.broadcast %11 : vector<16x1xf32> to vector<16x128xf32>
    %20 = arith.subf %3, %19 : vector<16x128xf32>
    %cst_13 = arith.constant 9.99999997E-7 : f32
    %21 = vector.broadcast %cst_13 : f32 to vector<16x1xf32>
    %22 = arith.addf %18, %21 : vector<16x1xf32>
    %23 = math.rsqrt %22 : vector<16x1xf32>
    %24 = vector.broadcast %23 : vector<16x1xf32> to vector<16x128xf32>
    %25 = arith.mulf %20, %24 : vector<16x128xf32>
    %26 = vector.broadcast %5 : vector<1x128xf32> to vector<16x128xf32>
    %27 = arith.mulf %25, %26 : vector<16x128xf32>
    %28 = vector.broadcast %7 : vector<1x128xf32> to vector<16x128xf32>
    %29 = arith.addf %27, %28 : vector<16x128xf32>
    %30 = arith.truncf %29 : vector<16x128xf32> to vector<16x128xbf16>
    %c0_14 = arith.constant 0 : index
    %c0_15 = arith.constant 0 : index
    %c0_16 = arith.constant 0 : index
    %c0_17 = arith.constant 0 : index
    %31 = vector.load %arg6[%c0_14, %c0_15, %c0_16, %c0_17] : memref<1x4x128x128xbf16, #tpu.memory_space<vmem>>, vector<1x1x128x128xbf16>
    %32 = vector.shape_cast %31 : vector<1x1x128x128xbf16> to vector<128x128xbf16>
    %cst_18 = arith.constant dense<0.000000e+00> : vector<16x128xf32>
    %33 = tpu.matmul %30, %32, %cst_18 {dimension_numbers = #tpu.dot_dimension_numbers<[1], [0], [0], [1], [0, 0, 1, 1], [], []>} : vector<16x128xbf16>, vector<128x128xbf16>, vector<16x128xf32> -> vector<16x128xf32>
    %c0_19 = arith.constant 0 : index
    %c0_20 = arith.constant 0 : index
    %c0_21 = arith.constant 0 : index
    %c0_22 = arith.constant 0 : index
    %34 = vector.load %arg7[%c0_19, %c0_20, %c0_21, %c0_22] : memref<1x4x1x128xf32, #tpu.memory_space<vmem>>, vector<1x1x1x128xf32>
    %35 = vector.shape_cast %34 : vector<1x1x1x128xf32> to vector<1x128xf32>
    %36 = vector.broadcast %35 : vector<1x128xf32> to vector<16x128xf32>
    %37 = arith.addf %33, %36 : vector<16x128xf32>
    %c0_23 = arith.constant 0 : index
    %c1 = arith.constant 1 : index
    %c0_24 = arith.constant 0 : index
    %c0_25 = arith.constant 0 : index
    %38 = vector.load %arg6[%c0_23, %c1, %c0_24, %c0_25] : memref<1x4x128x128xbf16, #tpu.memory_space<vmem>>, vector<1x1x128x128xbf16>
    %39 = vector.shape_cast %38 : vector<1x1x128x128xbf16> to vector<128x128xbf16>
    %cst_26 = arith.constant dense<0.000000e+00> : vector<16x128xf32>
    %40 = tpu.matmul %30, %39, %cst_26 {dimension_numbers = #tpu.dot_dimension_numbers<[1], [0], [0], [1], [0, 0, 1, 1], [], []>} : vector<16x128xbf16>, vector<128x128xbf16>, vector<16x128xf32> -> vector<16x128xf32>
    %c0_27 = arith.constant 0 : index
    %c1_28 = arith.constant 1 : index
    %c0_29 = arith.constant 0 : index
    %c0_30 = arith.constant 0 : index
    %41 = vector.load %arg7[%c0_27, %c1_28, %c0_29, %c0_30] : memref<1x4x1x128xf32, #tpu.memory_space<vmem>>, vector<1x1x1x128xf32>
    %42 = vector.shape_cast %41 : vector<1x1x1x128xf32> to vector<1x128xf32>
    %43 = vector.broadcast %42 : vector<1x128xf32> to vector<16x128xf32>
    %44 = arith.addf %40, %43 : vector<16x128xf32>
    %c0_31 = arith.constant 0 : index
    %c2 = arith.constant 2 : index
    %c0_32 = arith.constant 0 : index
    %c0_33 = arith.constant 0 : index
    %45 = vector.load %arg6[%c0_31, %c2, %c0_32, %c0_33] : memref<1x4x128x128xbf16, #tpu.memory_space<vmem>>, vector<1x1x128x128xbf16>
    %46 = vector.shape_cast %45 : vector<1x1x128x128xbf16> to vector<128x128xbf16>
    %cst_34 = arith.constant dense<0.000000e+00> : vector<16x128xf32>
    %47 = tpu.matmul %30, %46, %cst_34 {dimension_numbers = #tpu.dot_dimension_numbers<[1], [0], [0], [1], [0, 0, 1, 1], [], []>} : vector<16x128xbf16>, vector<128x128xbf16>, vector<16x128xf32> -> vector<16x128xf32>
    %c0_35 = arith.constant 0 : index
    %c2_36 = arith.constant 2 : index
    %c0_37 = arith.constant 0 : index
    %c0_38 = arith.constant 0 : index
    %48 = vector.load %arg7[%c0_35, %c2_36, %c0_37, %c0_38] : memref<1x4x1x128xf32, #tpu.memory_space<vmem>>, vector<1x1x1x128xf32>
    %49 = vector.shape_cast %48 : vector<1x1x1x128xf32> to vector<1x128xf32>
    %50 = vector.broadcast %49 : vector<1x128xf32> to vector<16x128xf32>
    %51 = arith.addf %47, %50 : vector<16x128xf32>
    %52 = arith.truncf %37 : vector<16x128xf32> to vector<16x128xbf16>
    %53 = arith.truncf %44 : vector<16x128xf32> to vector<16x128xbf16>
    %54 = arith.truncf %51 : vector<16x128xf32> to vector<16x128xbf16>
    %55 = vector.extract_strided_slice %52 {offsets = [0, 0], sizes = [16, 32], strides = [1, 1]} : vector<16x128xbf16> to vector<16x32xbf16>
    %56 = vector.extract_strided_slice %53 {offsets = [0, 0], sizes = [16, 32], strides = [1, 1]} : vector<16x128xbf16> to vector<16x32xbf16>
    %cst_39 = arith.constant dense<0.000000e+00> : vector<16x16xf32>
    %57 = tpu.matmul %55, %56, %cst_39 {dimension_numbers = #tpu.dot_dimension_numbers<[1], [1], [0], [0], [0, 0, 1, 0], [], []>} : vector<16x32xbf16>, vector<16x32xbf16>, vector<16x16xf32> -> vector<16x16xf32>
    %cst_40 = arith.constant dense<0xFF800000> : vector<16xf32>
    %58 = vector.multi_reduction <maximumf>, %57, %cst_40 [1] : vector<16x16xf32> to vector<16xf32>
    %59 = vector.shape_cast %58 : vector<16xf32> to vector<16x1xf32>
    %60 = vector.broadcast %59 : vector<16x1xf32> to vector<16x16xf32>
    %61 = arith.subf %57, %60 : vector<16x16xf32>
    %62 = math.exp %61 : vector<16x16xf32>
    %cst_41 = arith.constant dense<0.000000e+00> : vector<16xf32>
    %63 = vector.multi_reduction <add>, %62, %cst_41 [1] : vector<16x16xf32> to vector<16xf32>
    %64 = vector.shape_cast %63 : vector<16xf32> to vector<16x1xf32>
    %65 = tpu.reciprocal %64 {approx = true} : vector<16x1xf32> -> vector<16x1xf32>
    %66 = vector.broadcast %65 : vector<16x1xf32> to vector<16x16xf32>
    %67 = arith.mulf %62, %66 : vector<16x16xf32>
    %68 = arith.truncf %67 : vector<16x16xf32> to vector<16x16xbf16>
    %69 = vector.extract_strided_slice %54 {offsets = [0, 0], sizes = [16, 32], strides = [1, 1]} : vector<16x128xbf16> to vector<16x32xbf16>
    %cst_42 = arith.constant dense<0.000000e+00> : vector<16x32xf32>
    %70 = tpu.matmul %68, %69, %cst_42 {dimension_numbers = #tpu.dot_dimension_numbers<[1], [0], [0], [1], [0, 0, 1, 1], [], []>} : vector<16x16xbf16>, vector<16x32xbf16>, vector<16x32xf32> -> vector<16x32xf32>
    %c0_43 = arith.constant 0 : index
    %c0_44 = arith.constant 0 : index
    %71 = vector.load %arg18[%c0_43, %c0_44] : memref<16x128xf32, #tpu.memory_space<vmem>>, vector<16x32xf32>
    tpu.vector_store %arg18[%c0_43, %c0_44], %70 {strides = array<i32>} : memref<16x128xf32, #tpu.memory_space<vmem>>, vector<16x32xf32>,
    %72 = vector.extract_strided_slice %52 {offsets = [0, 32], sizes = [16, 32], strides = [1, 1]} : vector<16x128xbf16> to vector<16x32xbf16>
    %73 = vector.extract_strided_slice %53 {offsets = [0, 32], sizes = [16, 32], strides = [1, 1]} : vector<16x128xbf16> to vector<16x32xbf16>
    %cst_45 = arith.constant dense<0.000000e+00> : vector<16x16xf32>
    %74 = tpu.matmul %72, %73, %cst_45 {dimension_numbers = #tpu.dot_dimension_numbers<[1], [1], [0], [0], [0, 0, 1, 0], [], []>} : vector<16x32xbf16>, vector<16x32xbf16>, vector<16x16xf32> -> vector<16x16xf32>
    %cst_46 = arith.constant dense<0xFF800000> : vector<16xf32>
    %75 = vector.multi_reduction <maximumf>, %74, %cst_46 [1] : vector<16x16xf32> to vector<16xf32>
    %76 = vector.shape_cast %75 : vector<16xf32> to vector<16x1xf32>
    %77 = vector.broadcast %76 : vector<16x1xf32> to vector<16x16xf32>
    %78 = arith.subf %74, %77 : vector<16x16xf32>
    %79 = math.exp %78 : vector<16x16xf32>
    %cst_47 = arith.constant dense<0.000000e+00> : vector<16xf32>
    %80 = vector.multi_reduction <add>, %79, %cst_47 [1] : vector<16x16xf32> to vector<16xf32>
    %81 = vector.shape_cast %80 : vector<16xf32> to vector<16x1xf32>
    %82 = tpu.reciprocal %81 {approx = true} : vector<16x1xf32> -> vector<16x1xf32>
    %83 = vector.broadcast %82 : vector<16x1xf32> to vector<16x16xf32>
    %84 = arith.mulf %79, %83 : vector<16x16xf32>
    %85 = arith.truncf %84 : vector<16x16xf32> to vector<16x16xbf16>
    %86 = vector.extract_strided_slice %54 {offsets = [0, 32], sizes = [16, 32], strides = [1, 1]} : vector<16x128xbf16> to vector<16x32xbf16>
    %cst_48 = arith.constant dense<0.000000e+00> : vector<16x32xf32>
    %87 = tpu.matmul %85, %86, %cst_48 {dimension_numbers = #tpu.dot_dimension_numbers<[1], [0], [0], [1], [0, 0, 1, 1], [], []>} : vector<16x16xbf16>, vector<16x32xbf16>, vector<16x32xf32> -> vector<16x32xf32>
    %c0_49 = arith.constant 0 : index
    %c32 = arith.constant 32 : index
    %88 = vector.load %arg18[%c0_49, %c32] : memref<16x128xf32, #tpu.memory_space<vmem>>, vector<16x32xf32>
    tpu.vector_store %arg18[%c0_49, %c32], %87 {strides = array<i32>} : memref<16x128xf32, #tpu.memory_space<vmem>>, vector<16x32xf32>,
    %89 = vector.extract_strided_slice %52 {offsets = [0, 64], sizes = [16, 32], strides = [1, 1]} : vector<16x128xbf16> to vector<16x32xbf16>
    %90 = vector.extract_strided_slice %53 {offsets = [0, 64], sizes = [16, 32], strides = [1, 1]} : vector<16x128xbf16> to vector<16x32xbf16>
    %cst_50 = arith.constant dense<0.000000e+00> : vector<16x16xf32>
    %91 = tpu.matmul %89, %90, %cst_50 {dimension_numbers = #tpu.dot_dimension_numbers<[1], [1], [0], [0], [0, 0, 1, 0], [], []>} : vector<16x32xbf16>, vector<16x32xbf16>, vector<16x16xf32> -> vector<16x16xf32>
    %cst_51 = arith.constant dense<0xFF800000> : vector<16xf32>
    %92 = vector.multi_reduction <maximumf>, %91, %cst_51 [1] : vector<16x16xf32> to vector<16xf32>
    %93 = vector.shape_cast %92 : vector<16xf32> to vector<16x1xf32>
    %94 = vector.broadcast %93 : vector<16x1xf32> to vector<16x16xf32>
    %95 = arith.subf %91, %94 : vector<16x16xf32>
    %96 = math.exp %95 : vector<16x16xf32>
    %cst_52 = arith.constant dense<0.000000e+00> : vector<16xf32>
    %97 = vector.multi_reduction <add>, %96, %cst_52 [1] : vector<16x16xf32> to vector<16xf32>
    %98 = vector.shape_cast %97 : vector<16xf32> to vector<16x1xf32>
    %99 = tpu.reciprocal %98 {approx = true} : vector<16x1xf32> -> vector<16x1xf32>
    %100 = vector.broadcast %99 : vector<16x1xf32> to vector<16x16xf32>
    %101 = arith.mulf %96, %100 : vector<16x16xf32>
    %102 = arith.truncf %101 : vector<16x16xf32> to vector<16x16xbf16>
    %103 = vector.extract_strided_slice %54 {offsets = [0, 64], sizes = [16, 32], strides = [1, 1]} : vector<16x128xbf16> to vector<16x32xbf16>
    %cst_53 = arith.constant dense<0.000000e+00> : vector<16x32xf32>
    %104 = tpu.matmul %102, %103, %cst_53 {dimension_numbers = #tpu.dot_dimension_numbers<[1], [0], [0], [1], [0, 0, 1, 1], [], []>} : vector<16x16xbf16>, vector<16x32xbf16>, vector<16x32xf32> -> vector<16x32xf32>
    %c0_54 = arith.constant 0 : index
    %c64 = arith.constant 64 : index
    %105 = vector.load %arg18[%c0_54, %c64] : memref<16x128xf32, #tpu.memory_space<vmem>>, vector<16x32xf32>
    tpu.vector_store %arg18[%c0_54, %c64], %104 {strides = array<i32>} : memref<16x128xf32, #tpu.memory_space<vmem>>, vector<16x32xf32>,
    %106 = vector.extract_strided_slice %52 {offsets = [0, 96], sizes = [16, 32], strides = [1, 1]} : vector<16x128xbf16> to vector<16x32xbf16>
    %107 = vector.extract_strided_slice %53 {offsets = [0, 96], sizes = [16, 32], strides = [1, 1]} : vector<16x128xbf16> to vector<16x32xbf16>
    %cst_55 = arith.constant dense<0.000000e+00> : vector<16x16xf32>
    %108 = tpu.matmul %106, %107, %cst_55 {dimension_numbers = #tpu.dot_dimension_numbers<[1], [1], [0], [0], [0, 0, 1, 0], [], []>} : vector<16x32xbf16>, vector<16x32xbf16>, vector<16x16xf32> -> vector<16x16xf32>
    %cst_56 = arith.constant dense<0xFF800000> : vector<16xf32>
    %109 = vector.multi_reduction <maximumf>, %108, %cst_56 [1] : vector<16x16xf32> to vector<16xf32>
    %110 = vector.shape_cast %109 : vector<16xf32> to vector<16x1xf32>
    %111 = vector.broadcast %110 : vector<16x1xf32> to vector<16x16xf32>
    %112 = arith.subf %108, %111 : vector<16x16xf32>
    %113 = math.exp %112 : vector<16x16xf32>
    %cst_57 = arith.constant dense<0.000000e+00> : vector<16xf32>
    %114 = vector.multi_reduction <add>, %113, %cst_57 [1] : vector<16x16xf32> to vector<16xf32>
    %115 = vector.shape_cast %114 : vector<16xf32> to vector<16x1xf32>
    %116 = tpu.reciprocal %115 {approx = true} : vector<16x1xf32> -> vector<16x1xf32>
    %117 = vector.broadcast %116 : vector<16x1xf32> to vector<16x16xf32>
    %118 = arith.mulf %113, %117 : vector<16x16xf32>
    %119 = arith.truncf %118 : vector<16x16xf32> to vector<16x16xbf16>
    %120 = vector.extract_strided_slice %54 {offsets = [0, 96], sizes = [16, 32], strides = [1, 1]} : vector<16x128xbf16> to vector<16x32xbf16>
    %cst_58 = arith.constant dense<0.000000e+00> : vector<16x32xf32>
    %121 = tpu.matmul %119, %120, %cst_58 {dimension_numbers = #tpu.dot_dimension_numbers<[1], [0], [0], [1], [0, 0, 1, 1], [], []>} : vector<16x16xbf16>, vector<16x32xbf16>, vector<16x32xf32> -> vector<16x32xf32>
    %c0_59 = arith.constant 0 : index
    %c96 = arith.constant 96 : index
    %122 = vector.load %arg18[%c0_59, %c96] : memref<16x128xf32, #tpu.memory_space<vmem>>, vector<16x32xf32>
    tpu.vector_store %arg18[%c0_59, %c96], %121 {strides = array<i32>} : memref<16x128xf32, #tpu.memory_space<vmem>>, vector<16x32xf32>,
    %c0_60 = arith.constant 0 : index
    %c0_61 = arith.constant 0 : index
    %123 = vector.load %arg18[%c0_60, %c0_61] : memref<16x128xf32, #tpu.memory_space<vmem>>, vector<16x128xf32>
    %124 = arith.truncf %123 : vector<16x128xf32> to vector<16x128xbf16>
    %c0_62 = arith.constant 0 : index
    %c3 = arith.constant 3 : index
    %c0_63 = arith.constant 0 : index
    %c0_64 = arith.constant 0 : index
    %125 = vector.load %arg6[%c0_62, %c3, %c0_63, %c0_64] : memref<1x4x128x128xbf16, #tpu.memory_space<vmem>>, vector<1x1x128x128xbf16>
    %126 = vector.shape_cast %125 : vector<1x1x128x128xbf16> to vector<128x128xbf16>
    %cst_65 = arith.constant dense<0.000000e+00> : vector<16x128xf32>
    %127 = tpu.matmul %124, %126, %cst_65 {dimension_numbers = #tpu.dot_dimension_numbers<[1], [0], [0], [1], [0, 0, 1, 1], [], []>} : vector<16x128xbf16>, vector<128x128xbf16>, vector<16x128xf32> -> vector<16x128xf32>
    %c0_66 = arith.constant 0 : index
    %c3_67 = arith.constant 3 : index
    %c0_68 = arith.constant 0 : index
    %c0_69 = arith.constant 0 : index
    %128 = vector.load %arg7[%c0_66, %c3_67, %c0_68, %c0_69] : memref<1x4x1x128xf32, #tpu.memory_space<vmem>>, vector<1x1x1x128xf32>
    %129 = vector.shape_cast %128 : vector<1x1x1x128xf32> to vector<1x128xf32>
    %130 = vector.broadcast %129 : vector<1x128xf32> to vector<16x128xf32>
    %131 = arith.addf %127, %130 : vector<16x128xf32>
    %132 = arith.addf %3, %131 : vector<16x128xf32>
    %c0_70 = arith.constant 0 : index
    %c1_71 = arith.constant 1 : index
    %c0_72 = arith.constant 0 : index
    %c0_73 = arith.constant 0 : index
    %133 = vector.load %arg8[%c0_70, %c1_71, %c0_72, %c0_73] : memref<1x2x1x128xf32, #tpu.memory_space<vmem>>, vector<1x1x1x128xf32>
    %134 = vector.shape_cast %133 : vector<1x1x1x128xf32> to vector<1x128xf32>
    %c0_74 = arith.constant 0 : index
    %c1_75 = arith.constant 1 : index
    %c0_76 = arith.constant 0 : index
    %c0_77 = arith.constant 0 : index
    %135 = vector.load %arg9[%c0_74, %c1_75, %c0_76, %c0_77] : memref<1x2x1x128xf32, #tpu.memory_space<vmem>>, vector<1x1x1x128xf32>
    %136 = vector.shape_cast %135 : vector<1x1x1x128xf32> to vector<1x128xf32>
    %cst_78 = arith.constant dense<0.000000e+00> : vector<16xf32>
    %137 = vector.multi_reduction <add>, %132, %cst_78 [1] : vector<16x128xf32> to vector<16xf32>
    %138 = vector.shape_cast %137 : vector<16xf32> to vector<16x1xf32>
    %cst_79 = arith.constant 1.280000e+02 : f32
    %139 = vector.broadcast %cst_79 : f32 to vector<16x1xf32>
    %140 = arith.divf %138, %139 : vector<16x1xf32>
    %141 = vector.broadcast %140 : vector<16x1xf32> to vector<16x128xf32>
    %142 = arith.subf %132, %141 : vector<16x128xf32>
    %143 = arith.mulf %142, %142 : vector<16x128xf32>
    %cst_80 = arith.constant dense<0.000000e+00> : vector<16xf32>
    %144 = vector.multi_reduction <add>, %143, %cst_80 [1] : vector<16x128xf32> to vector<16xf32>
    %145 = vector.shape_cast %144 : vector<16xf32> to vector<16x1xf32>
    %cst_81 = arith.constant 1.280000e+02 : f32
    %146 = vector.broadcast %cst_81 : f32 to vector<16x1xf32>
    %147 = arith.divf %145, %146 : vector<16x1xf32>
    %148 = vector.broadcast %140 : vector<16x1xf32> to vector<16x128xf32>
    %149 = arith.subf %132, %148 : vector<16x128xf32>
    %cst_82 = arith.constant 9.99999997E-7 : f32
    %150 = vector.broadcast %cst_82 : f32 to vector<16x1xf32>
    %151 = arith.addf %147, %150 : vector<16x1xf32>
    %152 = math.rsqrt %151 : vector<16x1xf32>
    %153 = vector.broadcast %152 : vector<16x1xf32> to vector<16x128xf32>
    %154 = arith.mulf %149, %153 : vector<16x128xf32>
    %155 = vector.broadcast %134 : vector<1x128xf32> to vector<16x128xf32>
    %156 = arith.mulf %154, %155 : vector<16x128xf32>
    %157 = vector.broadcast %136 : vector<1x128xf32> to vector<16x128xf32>
    %158 = arith.addf %156, %157 : vector<16x128xf32>
    %159 = arith.truncf %158 : vector<16x128xf32> to vector<16x128xbf16>
    %c0_83 = arith.constant 0 : index
    %c0_84 = arith.constant 0 : index
    %c0_85 = arith.constant 0 : index
    %160 = vector.load %arg10[%c0_83, %c0_84, %c0_85] : memref<1x128x256xbf16, #tpu.memory_space<vmem>>, vector<1x128x256xbf16>
    %161 = vector.shape_cast %160 : vector<1x128x256xbf16> to vector<128x256xbf16>
    %cst_86 = arith.constant dense<0.000000e+00> : vector<16x256xf32>
    %162 = tpu.matmul %159, %161, %cst_86 {dimension_numbers = #tpu.dot_dimension_numbers<[1], [0], [0], [1], [0, 0, 1, 1], [], []>} : vector<16x128xbf16>, vector<128x256xbf16>, vector<16x256xf32> -> vector<16x256xf32>
    %c0_87 = arith.constant 0 : index
    %c0_88 = arith.constant 0 : index
    %c0_89 = arith.constant 0 : index
    %163 = vector.load %arg11[%c0_87, %c0_88, %c0_89] : memref<1x1x256xf32, #tpu.memory_space<vmem>>, vector<1x1x256xf32>
    %164 = vector.shape_cast %163 : vector<1x1x256xf32> to vector<1x256xf32>
    %165 = vector.broadcast %164 : vector<1x256xf32> to vector<16x256xf32>
    %166 = arith.addf %162, %165 : vector<16x256xf32>
    %cst_90 = arith.constant 5.000000e-01 : f32
    %167 = vector.broadcast %cst_90 : f32 to vector<16x256xf32>
    %168 = arith.mulf %167, %166 : vector<16x256xf32>
    %cst_91 = arith.constant 4.471500e-02 : f32
    %169 = vector.broadcast %cst_91 : f32 to vector<16x256xf32>
    %170 = arith.mulf %169, %166 : vector<16x256xf32>
    %171 = arith.mulf %170, %166 : vector<16x256xf32>
    %172 = arith.mulf %171, %166 : vector<16x256xf32>
    %173 = arith.addf %166, %172 : vector<16x256xf32>
    %cst_92 = arith.constant 0.797884583 : f32
    %174 = vector.broadcast %cst_92 : f32 to vector<16x256xf32>
    %175 = arith.mulf %174, %173 : vector<16x256xf32>
    %176 = math.tanh %175 : vector<16x256xf32>
    %cst_93 = arith.constant 1.000000e+00 : f32
    %177 = vector.broadcast %cst_93 : f32 to vector<16x256xf32>
    %178 = arith.addf %177, %176 : vector<16x256xf32>
    %179 = arith.mulf %168, %178 : vector<16x256xf32>
    %180 = arith.truncf %179 : vector<16x256xf32> to vector<16x256xbf16>
    %c0_94 = arith.constant 0 : index
    %c0_95 = arith.constant 0 : index
    %c0_96 = arith.constant 0 : index
    %181 = vector.load %arg12[%c0_94, %c0_95, %c0_96] : memref<1x256x128xbf16, #tpu.memory_space<vmem>>, vector<1x256x128xbf16>
    %182 = vector.shape_cast %181 : vector<1x256x128xbf16> to vector<256x128xbf16>
    %cst_97 = arith.constant dense<0.000000e+00> : vector<16x128xf32>
    %183 = tpu.matmul %180, %182, %cst_97 {dimension_numbers = #tpu.dot_dimension_numbers<[1], [0], [0], [1], [0, 0, 1, 1], [], []>} : vector<16x256xbf16>, vector<256x128xbf16>, vector<16x128xf32> -> vector<16x128xf32>
    %c0_98 = arith.constant 0 : index
    %c0_99 = arith.constant 0 : index
    %c0_100 = arith.constant 0 : index
    %184 = vector.load %arg13[%c0_98, %c0_99, %c0_100] : memref<1x1x128xf32, #tpu.memory_space<vmem>>, vector<1x1x128xf32>
    %185 = vector.shape_cast %184 : vector<1x1x128xf32> to vector<1x128xf32>
    %186 = vector.broadcast %185 : vector<1x128xf32> to vector<16x128xf32>
    %187 = arith.addf %183, %186 : vector<16x128xf32>
    %188 = arith.addf %132, %187 : vector<16x128xf32>
    %c0_101 = arith.constant 0 : index
    %c0_102 = arith.constant 0 : index
    %189 = vector.load %arg17[%c0_101, %c0_102] : memref<16x128xf32, #tpu.memory_space<vmem>>, vector<16x128xf32>
    tpu.vector_store %arg17[%c0_101, %c0_102], %188 {strides = array<i32>} : memref<16x128xf32, #tpu.memory_space<vmem>>, vector<16x128xf32>,
    %c1_i32 = arith.constant 1 : i32
    %190 = arith.cmpi eq, %arg1, %c1_i32 : i32
    %191 = arith.extui %190 : i1 to i32
    %c0_i32_103 = arith.constant 0 : i32
    %192 = arith.cmpi ne, %191, %c0_i32_103 : i32
    scf.if %192 {
      %c0_104 = arith.constant 0 : index
      %c0_105 = arith.constant 0 : index
      %193 = vector.load %arg14[%c0_104, %c0_105] : memref<1x128xf32, #tpu.memory_space<vmem>>, vector<1x128xf32>
      %c0_106 = arith.constant 0 : index
      %c0_107 = arith.constant 0 : index
      %194 = vector.load %arg15[%c0_106, %c0_107] : memref<1x128xf32, #tpu.memory_space<vmem>>, vector<1x128xf32>
      %cst_108 = arith.constant dense<0.000000e+00> : vector<16xf32>
      %195 = vector.multi_reduction <add>, %188, %cst_108 [1] : vector<16x128xf32> to vector<16xf32>
      %196 = vector.shape_cast %195 : vector<16xf32> to vector<16x1xf32>
      %cst_109 = arith.constant 1.280000e+02 : f32
      %197 = vector.broadcast %cst_109 : f32 to vector<16x1xf32>
      %198 = arith.divf %196, %197 : vector<16x1xf32>
      %199 = vector.broadcast %198 : vector<16x1xf32> to vector<16x128xf32>
      %200 = arith.subf %188, %199 : vector<16x128xf32>
      %201 = arith.mulf %200, %200 : vector<16x128xf32>
      %cst_110 = arith.constant dense<0.000000e+00> : vector<16xf32>
      %202 = vector.multi_reduction <add>, %201, %cst_110 [1] : vector<16x128xf32> to vector<16xf32>
      %203 = vector.shape_cast %202 : vector<16xf32> to vector<16x1xf32>
      %cst_111 = arith.constant 1.280000e+02 : f32
      %204 = vector.broadcast %cst_111 : f32 to vector<16x1xf32>
      %205 = arith.divf %203, %204 : vector<16x1xf32>
      %206 = vector.broadcast %198 : vector<16x1xf32> to vector<16x128xf32>
      %207 = arith.subf %188, %206 : vector<16x128xf32>
      %cst_112 = arith.constant 9.99999997E-7 : f32
      %208 = vector.broadcast %cst_112 : f32 to vector<16x1xf32>
      %209 = arith.addf %205, %208 : vector<16x1xf32>
      %210 = math.rsqrt %209 : vector<16x1xf32>
      %211 = vector.broadcast %210 : vector<16x1xf32> to vector<16x128xf32>
      %212 = arith.mulf %207, %211 : vector<16x128xf32>
      %213 = vector.broadcast %193 : vector<1x128xf32> to vector<16x128xf32>
      %214 = arith.mulf %212, %213 : vector<16x128xf32>
      %215 = vector.broadcast %194 : vector<1x128xf32> to vector<16x128xf32>
      %216 = arith.addf %214, %215 : vector<16x128xf32>
      %c0_113 = arith.constant 0 : index
      %c0_114 = arith.constant 0 : index
      %c0_115 = arith.constant 0 : index
      %217 = vector.load %arg16[%c0_113, %c0_114, %c0_115] : memref<1x16x128xf32, #tpu.memory_space<vmem>>, vector<1x16x128xf32>
      %218 = vector.shape_cast %217 : vector<1x16x128xf32> to vector<16x128xf32>
      %219 = vector.shape_cast %216 : vector<16x128xf32> to vector<1x16x128xf32>
      tpu.vector_store %arg16[%c0_113, %c0_114, %c0_115], %219 {strides = array<i32>} : memref<1x16x128xf32, #tpu.memory_space<vmem>>, vector<1x16x128xf32>,
    } else {
    }
    return
  }
  func.func @transform_0(%arg0: i32, %arg1: i32) -> (i32, i32, i32) {
    %c0_i32 = arith.constant 0 : i32
    %c0_i32_0 = arith.constant 0 : i32
    %c0_i32_1 = arith.constant 0 : i32
    return %arg0, %c0_i32, %c0_i32_0 : i32, i32, i32
  }
  func.func @transform_1(%arg0: i32, %arg1: i32) -> (i32, i32) {
    %c0_i32 = arith.constant 0 : i32
    %c0_i32_0 = arith.constant 0 : i32
    %c0_i32_1 = arith.constant 0 : i32
    return %c0_i32, %c0_i32_0 : i32, i32
  }
  func.func @transform_2(%arg0: i32, %arg1: i32) -> (i32, i32) {
    %c0_i32 = arith.constant 0 : i32
    %c0_i32_0 = arith.constant 0 : i32
    %c0_i32_1 = arith.constant 0 : i32
    return %c0_i32, %c0_i32_0 : i32, i32
  }
  func.func @transform_3(%arg0: i32, %arg1: i32) -> (i32, i32) {
    %c0_i32 = arith.constant 0 : i32
    %c0_i32_0 = arith.constant 0 : i32
    %c0_i32_1 = arith.constant 0 : i32
    return %c0_i32, %c0_i32_0 : i32, i32
  }
  func.func @transform_4(%arg0: i32, %arg1: i32) -> (i32, i32, i32, i32) {
    %c0_i32 = arith.constant 0 : i32
    %c0_i32_0 = arith.constant 0 : i32
    %c0_i32_1 = arith.constant 0 : i32
    %c0_i32_2 = arith.constant 0 : i32
    return %arg1, %c0_i32, %c0_i32_0, %c0_i32_1 : i32, i32, i32, i32
  }
  func.func @transform_5(%arg0: i32, %arg1: i32) -> (i32, i32, i32, i32) {
    %c0_i32 = arith.constant 0 : i32
    %c0_i32_0 = arith.constant 0 : i32
    %c0_i32_1 = arith.constant 0 : i32
    %c0_i32_2 = arith.constant 0 : i32
    return %arg1, %c0_i32, %c0_i32_0, %c0_i32_1 : i32, i32, i32, i32
  }
  func.func @transform_6(%arg0: i32, %arg1: i32) -> (i32, i32, i32, i32) {
    %c0_i32 = arith.constant 0 : i32
    %c0_i32_0 = arith.constant 0 : i32
    %c0_i32_1 = arith.constant 0 : i32
    %c0_i32_2 = arith.constant 0 : i32
    return %arg1, %c0_i32, %c0_i32_0, %c0_i32_1 : i32, i32, i32, i32
  }
  func.func @transform_7(%arg0: i32, %arg1: i32) -> (i32, i32, i32, i32) {
    %c0_i32 = arith.constant 0 : i32
    %c0_i32_0 = arith.constant 0 : i32
    %c0_i32_1 = arith.constant 0 : i32
    %c0_i32_2 = arith.constant 0 : i32
    return %arg1, %c0_i32, %c0_i32_0, %c0_i32_1 : i32, i32, i32, i32
  }
  func.func @transform_8(%arg0: i32, %arg1: i32) -> (i32, i32, i32) {
    %c0_i32 = arith.constant 0 : i32
    %c0_i32_0 = arith.constant 0 : i32
    %c0_i32_1 = arith.constant 0 : i32
    return %arg1, %c0_i32, %c0_i32_0 : i32, i32, i32
  }
  func.func @transform_9(%arg0: i32, %arg1: i32) -> (i32, i32, i32) {
    %c0_i32 = arith.constant 0 : i32
    %c0_i32_0 = arith.constant 0 : i32
    %c0_i32_1 = arith.constant 0 : i32
    return %arg1, %c0_i32, %c0_i32_0 : i32, i32, i32
  }
  func.func @transform_10(%arg0: i32, %arg1: i32) -> (i32, i32, i32) {
    %c0_i32 = arith.constant 0 : i32
    %c0_i32_0 = arith.constant 0 : i32
    %c0_i32_1 = arith.constant 0 : i32
    return %arg1, %c0_i32, %c0_i32_0 : i32, i32, i32
  }
  func.func @transform_11(%arg0: i32, %arg1: i32) -> (i32, i32, i32) {
    %c0_i32 = arith.constant 0 : i32
    %c0_i32_0 = arith.constant 0 : i32
    %c0_i32_1 = arith.constant 0 : i32
    return %arg1, %c0_i32, %c0_i32_0 : i32, i32, i32
  }
  func.func @transform_12(%arg0: i32, %arg1: i32) -> (i32, i32) {
    %c0_i32 = arith.constant 0 : i32
    %c0_i32_0 = arith.constant 0 : i32
    %c0_i32_1 = arith.constant 0 : i32
    return %c0_i32, %c0_i32_0 : i32, i32
  }
  func.func @transform_13(%arg0: i32, %arg1: i32) -> (i32, i32) {
    %c0_i32 = arith.constant 0 : i32
    %c0_i32_0 = arith.constant 0 : i32
    %c0_i32_1 = arith.constant 0 : i32
    return %c0_i32, %c0_i32_0 : i32, i32
  }
  func.func @transform_14(%arg0: i32, %arg1: i32) -> (i32, i32, i32) {
    %c0_i32 = arith.constant 0 : i32
    %c0_i32_0 = arith.constant 0 : i32
    %c0_i32_1 = arith.constant 0 : i32
    return %arg0, %c0_i32, %c0_i32_0 : i32, i32, i32
  }
}

</mosaic_0001>

<bundles_post_ra>
// kernel: siglip_vision_transformer.1
= control target key start
LH: loop header
LB: loop body
LE: loop exit
PB: predicated region body
PF: predicated region fallthrough
CT: control target
= control target key end

     0   :  { %s3362_s0 = inlined_call_operand.vmem [shape: bf16[2,16,192], index: 0, kind: input, shape index: {}]   ;;  %s3363_s1 = inlined_call_operand.vmem [shape: bf16[192,128], index: 1, kind: input, shape index: {}]   ;;  %s3364_s2 = inlined_call_operand.vmem [shape: f32[1,128], index: 2, kind: input, shape index: {}]   ;;  %s3365_s3 = inlined_call_operand.vmem [shape: f32[16,128], index: 3, kind: input, shape index: {}]   ;;  %s3366_s4 = inlined_call_operand.vmem [shape: bf16[2,4,128,128], index: 4, kind: input, shape index: {}]   ;;  %s3367_s5 = inlined_call_operand.vmem [shape: f32[2,4,1,128], index: 5, kind: input, shape index: {}]   ;;  %s3368_s6 = inlined_call_operand.vmem [shape: f32[2,2,1,128], index: 6, kind: input, shape index: {}]   ;;  %s3369_s7 = inlined_call_operand.vmem [shape: f32[2,2,1,128], index: 7, kind: input, shape index: {}]   ;;  %s3370_s8 = inlined_call_operand.vmem [shape: bf16[2,128,256], index: 8, kind: input, shape index: {}]   ;;  %s3371_s9 = inlined_call_operand.vmem [shape: f32[2,1,256], index: 9, kind: input, shape index: {}]   ;;  %s3372_s10 = inlined_call_operand.vmem [shape: bf16[2,256,128], index: 10, kind: input, shape index: {}]   ;;  %s3373_s11 = inlined_call_operand.vmem [shape: f32[2,1,128], index: 11, kind: input, shape index: {}]   ;;  %s3374_s12 = inlined_call_operand.vmem [shape: f32[1,128], index: 12, kind: input, shape index: {}]   ;;  %s3375_s13 = inlined_call_operand.vmem [shape: f32[1,128], index: 13, kind: input, shape index: {}]   ;;  %s3376_s14 = inlined_call_operand.hbm [shape: f32[2,16,128], index: 14, kind: output, shape index: {}]  }
   0x1   :  { %3391 = sst [smem:[#allocation19_spill]] %s3362_s0 }
   0x2   :  { %3392 = sst [smem:[#allocation20_spill]] %s3366_s4 }
   0x3   :  { %3393 = sst [smem:[#allocation21_spill]] %s3367_s5 }
   0x4   :  { %3394 = sst [smem:[#allocation22_spill]] %s3368_s6 }
   0x5   :  { %3395 = sst [smem:[#allocation23_spill]] %s3374_s12 }
   0x6   :  { %3396 = sst [smem:[#allocation24_spill]] %s3375_s13 }
   0x7   :  { %3397 = sst [smem:[#allocation25_spill]] %s3376_s14 }
   0x8   :  { %19 = vsyncpa [#allocation5], 0 }
   0x9   :  { %21 = vsyncpa [#allocation5 + $0x1], 0  ;;  %s2924_s29 = smov 0   ;;  %s2926_s30 = smov 0  }
   0xa   :  { %s2928_s15 = smov 0   ;;  %s2930_s16 = smov 0  }
   0xb   :  { %s2932_s17 = smov 0   ;;  %s2934_s18 = smov 0  }
   0xc   :  { %s2936_s19 = smov 0   ;;  %s2938_s20 = smov 0  }
   0xd LB: > { %3398 = sst [smem:[#allocation7_spill]] %s2813_s29  ;;  %s2122_s21 = sadd.s32 4294967295, %s2841_s20   ;;  %s2841_s20 = sphi %s2938_s20, %s27_s20   ;;  %s2837_s19 = sphi %s2936_s19, %s3432_s19   ;;  %s2833_s18 = sphi %s2934_s18, %s3431_s18   ;;  %s2829_s17 = sphi %s2932_s17, %s3430_s17   ;;  %s2825_s16 = sphi %s2930_s16, %s3429_s16   ;;  %s2821_s15 = sphi %s2928_s15, %s3428_s15   ;;  %s2817_s30 = sphi %s2926_s30, %s3427_s30   ;;  %s2813_s29 = sphi %s2924_s29, %s3426_s29  }
   0xe   : > { %3399 = sst [smem:[#allocation8_spill]] %s2817_s30  ;;  %s2123_s22 = sadd.s32 4294967294, %s2841_s20  }
   0xf   : > { %3400 = sst [smem:[#allocation9_spill]] %s2821_s15  ;;  %s36_s23 = sadd.s32 1, %s2833_s18 }
  0x10   : > { %3401 = sst [smem:[#allocation10_spill]] %s2829_s17  ;;  %p37_p0 = scmp.ge.s32.totalorder %s36_s23, 2 }
  0x11   : > { %3402 = sst [smem:[#allocation11_spill]] %s2833_s18  ;;  %s39_s24 = sadd.s32 1, %s2837_s19 }
  0x12   : > { %3403 = sst [smem:[#allocation12_spill]] %s2837_s19  ;;  %p395_p1 = scmp.ne.s32.totalorder %s2821_s15, %s2817_s30 }
  0x13   : > { %3404 = sst [smem:[#allocation13_spill]] %s2841_s20  ;;  %p396_p2 = scmp.eq.s32.totalorder %s2122_s21, 3 }
  0x14   : > { %s3434_s23 = smov (%p37_p0, %s36_s23), 0  ;;  %s3436_s24 = smov (!%p37_p0, %s39_s24), %s2837_s19 }
  0x15   : > { %3405 = sst [smem:[#allocation14_spill]] %s3434_s23  ;;  %p2973_p3 = por %p396_p2, %p395_p1 }
  0x16   : > { %p401_p4 = scmp.ne.s32.totalorder %s2817_s30, %s2813_s29  ;;  %p41_p5 = scmp.ge.s32.totalorder %s3436_s24, 2 }
  0x17   : > { %s3406_s25 = scalar_select %p2973_p3, 1, 0 }
  0x18   : > { %p402_p6 = scmp.eq.s32.totalorder %s2123_s22, 3  ;;  %p2126_p7 = scmp.ge.s32.totalorder %s2841_s20, 1 }
  0x19   : > { %3407 = sst [smem:[#allocation15_spill]] %s3406_s25  ;;  %p501_p8 = scmp.lt.s32.totalorder %s2841_s20, 5 }
  0x1a   : > { %s3438_s24 = smov (%p41_p5, %s3436_s24), 0  ;;  %p2983_p9 = por %p402_p6, %p401_p4 }
  0x1b   : > { %3408 = sst [smem:[#allocation16_spill]] %s3438_s24  ;;  %p502_p10 = pnand %p2126_p7, %p501_p8 }
  0x1c   : > { %s3409_s26 = scalar_select %p2983_p9, 1, 0 }
  0x1d   : > { %s382_s27 = ssub.s32 %s2837_s19, %s3438_s24  ;;  %s385_s28 = sadd.s32 1, %s2821_s15 }
  0x1e   : > { %3410 = sst [smem:[#allocation17_spill]] %s3409_s26  ;;  %p383_p11 = scmp.eq.s32.totalorder %s382_s27, 0 }
  0x1f   : > { %505 = sbr.rel (%p502_p10) target bundleno = 2763 (0xacb), region = 76  ;;  %s3383_s22 = sand.u32 (!%p502_p10), 1, %s2817_s30  }
  0x20   : > { %s2991_s21 = scalar_select %p383_p11, %s2821_s15, %s385_s28  }
  0x21   : > { %p581_p12 = scmp.lt.s32.totalorder (!%p502_p10), %s2829_s17, 1  ;;  %s2127_s23 = sshll.u32 (!%p502_p10), %s3383_s22, 4 }
  0x22   : > { %3411 = sst [smem:[#allocation18_spill]] %s2991_s21  ;;  %p586_p13 = scmp.lt.s32.totalorder (!%p502_p10), %s2825_s16, 1 }
  0x23   : > { %s3412_s0 = sld [smem:[#allocation19_spill]] (!%p502_p10)  ;;  %s3053_s29 = scalar_lea.vmem (!%p502_p10), [#allocation4], %s2127_s23 }
  0x24   : > { %s582_s18 = scalar_select %p581_p12, %s2829_s17, 1 }
  0x25   : > { %s3000_s26 = scalar_select %p586_p13, %s2825_s16, 1 }
  0x26   : > { %s2521_s27 = sshll.u32 %s582_s18, 4  ;;  %s3413_s4 = sld [smem:[#allocation20_spill]] }
  0x27   : > { %s2522_s21 = sshll.u32 %s3000_s26, 8  ;;  %s2132_s20 = sshll.u32 %s3000_s26, 2 }
  0x28   : > { %s3414_s5 = sld [smem:[#allocation21_spill]]  ;;  %s3020_s17 = sshll.u32 %s3000_s26, 1 }
  0x29   : > { %s3005_s19 = scalar_lea.vmem %s3412_s0, %s2521_s27  ;;  %s3415_s6 = sld [smem:[#allocation22_spill]] }
  0x2a   : > { %s3032_s15 = scalar_lea.vmem %s3369_s7, %s3020_s17  ;;  %s619_s27 = scalar_lea.vmem %s3373_s11, %s3000_s26 }
  0x2b   : > { %p2140_p0 = scmp.ne.s32.totalorder %s2825_s16, 0 }
  0x2c   : > { %s3011_s22 = scalar_lea.vmem %s3413_s4, %s2522_s21  ;;  %s2523_s21 = sshll.u32 %s3000_s26, 7 }
  0x2d   : > { %s3042_s4 = scalar_lea.vmem %s3370_s8, %s2523_s21  ;;  %624 = sbr.rel (%p2140_p0) target bundleno = 223 (0xdf), region = 80 }
  0x2e   : > { %s3017_s30 = scalar_lea.vmem %s3414_s5, %s2132_s20  ;;  %s611_s20 = scalar_lea.vmem %s3371_s9, %s3020_s17 }
  0x2f   : > { %s3026_s24 = scalar_lea.vmem %s3415_s6, %s3020_s17  ;;  %s3047_s5 = scalar_lea.vmem %s3372_s10, %s2523_s21 }
  0x32   : > { %v2534_v0 = vld [vmem:[%s3363_s1 + $0x38] sm:$0xff]  ;;  %v2533_v2 = vld [vmem:[%s3363_s1 + $0x30] sm:$0xff]  ;;  %v2532_v4 = vld [vmem:[%s3363_s1 + $0x28] sm:$0xff]  ;;  %vm736_vm0 = vcmask 523264  }
  0x33   : > { %v2538_v1 = vld [vmem:[%s3363_s1 + $0x58] sm:$0xff]  ;;  %740 = vmatpush.bf16.msra.mxu0 %v2534_v0  ;;  %v2537_v3 = vld [vmem:[%s3363_s1 + $0x50] sm:$0xff]  ;;  %v2536_v5 = vld [vmem:[%s3363_s1 + $0x48] sm:$0xff] }
  0x34   : > { %758 = vmatpush.bf16.msra.mxu1 %v2538_v1  ;;  %v2531_v6 = vld [vmem:[%s3363_s1 + $0x20] sm:$0xff]  ;;  %v2145_v9 = vld [vmem:[%s3005_s19 + $0x8] sm:$0xf0]  ;;  %v2530_v10 = vld [vmem:[%s3363_s1 + $0x18] sm:$0xff] }
  0x35   : > { %v2535_v7 = vld [vmem:[%s3363_s1 + $0x40] sm:$0xff]  ;;  %v2529_v12 = vld [vmem:[%s3363_s1 + $0x10] sm:$0xff]  ;;  %v2528_v13 = vld [vmem:[%s3363_s1 + $0x8] sm:$0xff] }
  0x36   : > { %v2525_v8 = vld [vmem:[%s3005_s19 + $0x4] sm:$0xf]  ;;  %v2143_v15 = vld [vmem:[%s3005_s19] sm:$0xf]  ;;  %v2526_v16 = vld [vmem:[%s3005_s19 + $0x4] sm:$0xf0] }
  0x37   : > { %741 = vmatpush.bf16.msra.mxu0 %v2533_v2  ;;  %v2148_v11 = vor.u32 %v2525_v8, %v2145_v9  ;;  %v2527_v14 = vld [vmem:[%s3363_s1] sm:$0xff]  ;;  %v2144_v17 = vor.u32 %v2526_v16, %v2143_v15  ;;  %v769_v28 = vld [vmem:[%s3365_s3 + $0x8] sm:$0xff] }
  0x38   : > { %759 = vmatpush.bf16.msra.mxu1 %v2537_v3  ;;  %v2681_v18 = vld [vmem:[%s3364_s2] ss:$0 sm:$0xff] }
  0x39   : > { %v768_v22 = vld [vmem:[%s3365_s3] sm:$0xff] }
  0x3b   : > { %742 = vmatpush.bf16.msra.mxu0 %v2532_v4 }
  0x3c   : > { %760 = vmatpush.bf16.msra.mxu1 %v2536_v5 }
  0x3f   : > { %743 = vmatpush.bf16.msra.mxu0 %v2531_v6 }
  0x40   : > { %761 = vmatpush.bf16.msra.mxu1 %v2535_v7 }
  0x43   : > { %744 = vmatpush.bf16.msra.mxu0 %v2530_v10  ;;  %2197 = vmatmul.msk.bf16.vlgmr.msra.gmra.mxu1 %vm736_vm0, %v2148_v11 }
  0x47   : > { %745 = vmatpush.bf16.msra.mxu0 %v2529_v12 }
  0x4b   : > { %746 = vmatpush.bf16.msra.mxu0 %v2528_v13 }
  0x4f   : > { %747 = vmatpush.bf16.msra.mxu0 %v2527_v14 }
  0x52   : > { %748 = vmatmul.bf16.vlgmr.msra.gmra.mxu0 %v2144_v17 }
  0xc0   : > { %v763_v19 = vpop.f32.mrf.mxu1 }
  0xc8   : > { %v765_v27 = vpop.f32.mrf.mxu1 }
  0xcf   : > { %v749_v20 = vpop.f32.mrf.mxu0 }
  0xd0   : > { %v750_v21 = vadd.f32 %v2681_v18, %v749_v20 }
  0xd2   : > { %v764_v23 = vadd.f32 %v763_v19, %v750_v21 }
  0xd4   : > { %v770_v24 = vadd.f32 %v768_v22, %v764_v23 }
  0xd6   : > { %772 = vst [vmem:[#allocation2] sm:$0xff] %v770_v24 }
  0xd7   : > { %v751_v25 = vpop.f32.mrf.mxu0 }
  0xd8   : > { %v752_v26 = vadd.f32 %v2681_v18, %v751_v25 }
  0xda   : > { %v766_v29 = vadd.f32 %v765_v27, %v752_v26 }
  0xdc   : > { %v771_v30 = vadd.f32 %v769_v28, %v766_v29 }
  0xde   : > { %773 = vst [vmem:[#allocation2 + $0x8] sm:$0xff] %v771_v30 }
  0xdf PF: > { %v3105_v31 = vld [vmem:[#allocation2] sm:$0xff]  ;;  %v2843_v33 = vmov 128.0   ;;  %v2546_v48 = vld [vmem:[%s3011_s22 + $0x38] sm:$0xff]  ;;  %v2545_v51 = vld [vmem:[%s3011_s22 + $0x30] sm:$0xff]  ;;  %vm1102_vm8 = vcmask 261120   ;;  %s2844_s18 = smov 96  }
  0xe0   : > { %778 = vadd.xlane.f32.xlu0 %v3105_v31  ;;  %2691 = vrcp.f32 %v2843_v33  ;;  %v2554_v49 = vld [vmem:[%s3011_s22 + $0x78] sm:$0xff]  ;;  %904 = vmatpush.bf16.msra.mxu0 %v2546_v48  ;;  %v2553_v52 = vld [vmem:[%s3011_s22 + $0x70] sm:$0xff]  ;;  %v2544_v54 = vld [vmem:[%s3011_s22 + $0x28] sm:$0xff]  ;;  %vm1123_vm9 = vcmask 130048   ;;  %s2845_s28 = smov 32   ;;  %s2846_s14 = smov 64  }
  0xe1   : > { %v2562_v50 = vld [vmem:[%s3011_s22 + $0xb8] sm:$0xff]  ;;  %988 = vmatpush.bf16.msra.mxu1 %v2554_v49  ;;  %v2561_v53 = vld [vmem:[%s3011_s22 + $0xb0] sm:$0xff]  ;;  %v2552_v55 = vld [vmem:[%s3011_s22 + $0x68] sm:$0xff]  ;;  %vm1247_vm10 = vcmask 523520   ;;  %vm1325_vm11 = vcmask 785920   ;;  %vm1403_vm12 = vcmask 1048320  }
  0xe2   : > { %1072 = vmatpush.bf16.msra.mxu2 %v2562_v50  ;;  %v2560_v56 = vld [vmem:[%s3011_s22 + $0xa8] sm:$0xff]  ;;  %v2543_v57 = vld [vmem:[%s3011_s22 + $0x20] sm:$0xff]  ;;  %v2542_v60 = vld [vmem:[%s3011_s22 + $0x18] sm:$0xff]  ;;  %p2515_p1 = scmp.ne.s32.totalorder %s2825_s16, 1 }
  0xe3   : > { %v2551_v58 = vld [vmem:[%s3011_s22 + $0x60] sm:$0xff]  ;;  %v2550_v61 = vld [vmem:[%s3011_s22 + $0x58] sm:$0xff]  ;;  %v2541_v63 = vld [vmem:[%s3011_s22 + $0x10] sm:$0xff] }
  0xe4   : > { %905 = vmatpush.bf16.msra.mxu0 %v2545_v51  ;;  %v2559_v59 = vld [vmem:[%s3011_s22 + $0xa0] sm:$0xff]  ;;  %v2558_v62 = vld [vmem:[%s3011_s22 + $0x98] sm:$0xff]  ;;  %v2549_v0 = vld [vmem:[%s3011_s22 + $0x50] sm:$0xff] }
  0xe5   : > { %v3108_v32 = vld [vmem:[#allocation2 + $0x8] sm:$0xff]  ;;  %989 = vmatpush.bf16.msra.mxu1 %v2553_v52  ;;  %v2557_v1 = vld [vmem:[%s3011_s22 + $0x90] sm:$0xff]  ;;  %v2539_v6 = vld [vmem:[%s3011_s22] sm:$0xff] }
  0xe6   : > { %v2692_v34 = vpop.eup %2691  ;;  %1073 = vmatpush.bf16.msra.mxu2 %v2561_v53  ;;  %v2540_v2 = vld [vmem:[%s3011_s22 + $0x8] sm:$0xff]  ;;  %v2547_v7 = vld [vmem:[%s3011_s22 + $0x40] sm:$0xff] }
  0xe7   : > { %v783_v35 = vmul.f32 128.0, %v2692_v34  ;;  %vm787_vm1 = vweird.f32 %v2692_v34  ;;  %v2548_v3 = vld [vmem:[%s3011_s22 + $0x48] sm:$0xff]  ;;  %v2555_v9 = vld [vmem:[%s3011_s22 + $0x80] sm:$0xff] }
  0xe8   : > { %780 = vadd.xlane.f32.xlu0 %v3108_v32  ;;  %906 = vmatpush.bf16.msra.mxu0 %v2544_v54  ;;  %v2556_v4 = vld [vmem:[%s3011_s22 + $0x88] sm:$0xff]  ;;  %v2682_v27 = vld [vmem:[%s3026_s24] ss:$0 sm:$0xff]  ;;  %v2686_v48 = vld [vmem:[%s3017_s30 + $0x2] ss:$0 sm:$0xff] }
  0xe9   : > { %v784_v36 = vsub.f32 1.0, %v783_v35  ;;  %990 = vmatpush.bf16.msra.mxu1 %v2552_v55 }
  0xea   : > { %1074 = vmatpush.bf16.msra.mxu2 %v2560_v56 }
  0xeb   : > { %v785_v37 = vmul.f32 %v2692_v34, %v784_v36 }
  0xec   : > { %907 = vmatpush.bf16.msra.mxu0 %v2543_v57 }
  0xed   : > { %v786_v38 = vadd.f32 %v2692_v34, %v785_v37  ;;  %991 = vmatpush.bf16.msra.mxu1 %v2551_v58 }
  0xee   : > { %1075 = vmatpush.bf16.msra.mxu2 %v2559_v59 }
  0xef   : > { %v3111_v39 = vsel %vm787_vm1, %v2692_v34, %v786_v38  ;;  %v2683_v34 = vld [vmem:[%s3032_s15] ss:$0 sm:$0xff] }
  0xf0   : > { %908 = vmatpush.bf16.msra.mxu0 %v2542_v60 }
  0xf1   : > { %992 = vmatpush.bf16.msra.mxu1 %v2550_v61 }
  0xf2   : > { %1076 = vmatpush.bf16.msra.mxu2 %v2558_v62 }
  0xf4   : > { %909 = vmatpush.bf16.msra.mxu0 %v2541_v63 }
  0xf5   : > { %993 = vmatpush.bf16.msra.mxu1 %v2549_v0 }
  0xf6   : > { %1077 = vmatpush.bf16.msra.mxu2 %v2557_v1 }
  0xf8   : > { %910 = vmatpush.bf16.msra.mxu0 %v2540_v2 }
  0xf9   : > { %994 = vmatpush.bf16.msra.mxu1 %v2548_v3 }
  0xfa   : > { %1078 = vmatpush.bf16.msra.mxu2 %v2556_v4 }
  0xfc   : > { %911 = vmatpush.bf16.msra.mxu0 %v2539_v6 }
  0xfd   : > { %995 = vmatpush.bf16.msra.mxu1 %v2547_v7 }
  0xfe   : > { %1079 = vmatpush.bf16.msra.mxu2 %v2555_v9 }
 0x153   : > { %v779_v40 = vpop.xlane.xlu0 %778 }
 0x154   : > { %v789_v41 = vmul.f32 %v3111_v39, %v779_v40 }
 0x156   : > { %v3115_v42 = vsub.f32 %v3105_v31, %v789_v41 }
 0x158   : > { %v793_v43 = vmul.f32 %v3115_v42, %v3115_v42 }
 0x15a   : > { %795 = vadd.xlane.f32.xlu1 %v793_v43  ;;  %v2685_v43 = vld [vmem:[%s3017_s30 + $0x1] ss:$0 sm:$0xff] }
 0x15b   : > { %v781_v44 = vpop.xlane.xlu0 %780 }
 0x15c   : > { %v790_v45 = vmul.f32 %v3111_v39, %v781_v44 }
 0x15e   : > { %v3121_v46 = vsub.f32 %v3108_v32, %v790_v45 }
 0x160   : > { %v794_v47 = vmul.f32 %v3121_v46, %v3121_v46 }
 0x162   : > { %797 = vadd.xlane.f32.xlu1 %v794_v47 }
 0x1cd   : > { %v796_v5 = vpop.xlane.xlu1 %795 }
 0x1ce   : > { %v799_v8 = vmul.f32 %v796_v5, %v3111_v39 }
 0x1d0   : > { %v801_v10 = vadd.f32 1e-06, %v799_v8 }
 0x1d2   : > { %2693 = vrsqrt.f32 %v801_v10  ;;  %vm809_vm3 = vweird.f32 %v801_v10 }
 0x1d5   : > { %v798_v11 = vpop.xlane.xlu1 %797 }
 0x1d6   : > { %v800_v12 = vmul.f32 %v798_v11, %v3111_v39 }
 0x1d8   : > { %v2694_v13 = vpop.eup %2693  ;;  %v802_v14 = vadd.f32 1e-06, %v800_v12 }
 0x1d9   : > { %v804_v15 = vmul.f32 %v2694_v13, %v801_v10  ;;  %vm810_vm2 = vweird.f32 %v2694_v13 }
 0x1da   : > { %2695 = vrsqrt.f32 %v802_v14  ;;  %vm811_vm4 = vmor %vm809_vm3, %vm810_vm2  ;;  %vm819_vm6 = vweird.f32 %v802_v14 }
 0x1db   : > { %v805_v16 = vmul.f32 %v2694_v13, %v804_v15 }
 0x1dd   : > { %v806_v17 = vmul.f32 0.5, %v805_v16 }
 0x1df   : > { %v807_v18 = vsub.f32 1.5, %v806_v17 }
 0x1e0   : > { %v2696_v19 = vpop.eup %2695 }
 0x1e1   : > { %v808_v20 = vmul.f32 %v2694_v13, %v807_v18  ;;  %v814_v21 = vmul.f32 %v2696_v19, %v802_v14  ;;  %vm820_vm5 = vweird.f32 %v2696_v19 }
 0x1e2   : > { %vm821_vm7 = vmor %vm819_vm6, %vm820_vm5 }
 0x1e3   : > { %v815_v22 = vmul.f32 %v2696_v19, %v814_v21  ;;  %v812_v23 = vsel %vm811_vm4, %v2694_v13, %v808_v20 }
 0x1e4   : > { %v823_v26 = vmul.f32 %v812_v23, %v3115_v42  ;;  %v2684_v42 = vld [vmem:[%s3017_s30] ss:$0 sm:$0xff] }
 0x1e5   : > { %v816_v24 = vmul.f32 0.5, %v815_v22 }
 0x1e6   : > { %v828_v33 = vmul.f32 %v2682_v27, %v823_v26 }
 0x1e7   : > { %v817_v25 = vsub.f32 1.5, %v816_v24 }
 0x1e8   : > { %v833_v36 = vadd.f32 %v2683_v34, %v828_v33 }
 0x1e9   : > { %v818_v28 = vmul.f32 %v2696_v19, %v817_v25 }
 0x1eb   : > { %v822_v29 = vsel %vm821_vm7, %v2696_v19, %v818_v28 }
 0x1ec   : > { %v824_v30 = vmul.f32 %v822_v29, %v3121_v46 }
 0x1ee   : > { %v829_v35 = vmul.f32 %v2682_v27, %v824_v30 }
 0x1f0   : > { %v834_v37 = vadd.f32 %v2683_v34, %v829_v35 }
 0x1f2   : > { %v835_v38 = vpack.c.bf16 %v834_v37, %v833_v36 }
 0x1f4   : > { %912 = vmatmul.bf16.vlgmr.msra.gmra.mxu0 %v835_v38  ;;  %996 = vmatmul.bf16.vlgmr.msra.gmra.mxu1 %v835_v38 }
 0x1f5   : > { %1080 = vmatmul.bf16.vlgmr.msra.gmra.mxu2 %v835_v38 }
 0x271   : > { %v913_v40 = vpop.f32.mrf.mxu0  ;;  %v997_v41 = vpop.f32.mrf.mxu1 }
 0x272   : > { %v914_v44 = vadd.f32 %v2684_v42, %v913_v40  ;;  %v998_v45 = vadd.f32 %v2685_v43, %v997_v41 }
 0x274   : > { %v1086_v50 = vpack.c.bf16 %v914_v44, %v914_v44  ;;  %v1088_v51 = vpack.c.bf16 %v998_v45, %v998_v45 }
 0x276   : > { %v1094_v57 = vunpack.c.l.b16 %v1086_v50  ;;  %v1099_v58 = vunpack.c.l.b16 %v1088_v51 }
 0x278   : > { %v1081_v47 = vpop.f32.mrf.mxu2 }
 0x279   : > { %v915_v49 = vpop.f32.mrf.mxu0  ;;  %v999_v46 = vpop.f32.mrf.mxu1  ;;  %v1082_v56 = vadd.f32 %v2686_v48, %v1081_v47 }
 0x27a   : > { %v916_v52 = vadd.f32 %v2684_v42, %v915_v49  ;;  %v1000_v53 = vadd.f32 %v2685_v43, %v999_v46 }
 0x27b   : > { %v1090_v0 = vpack.c.bf16 %v1082_v56, %v1082_v56 }
 0x27c   : > { %v1087_v54 = vpack.c.bf16 %v916_v52, %v916_v52  ;;  %v1089_v55 = vpack.c.bf16 %v1000_v53, %v1000_v53 }
 0x27d   : > { %v1149_v4 = vunpack.c.l.b16 %v1090_v0 }
 0x27e   : > { %v1095_v59 = vunpack.c.l.b16 %v1087_v54  ;;  %v1100_v60 = vunpack.c.l.b16 %v1089_v55 }
 0x280   : > { %v1096_v61 = vpack.c.b16 %v1095_v59, %v1094_v57  ;;  %v1101_v62 = vpack.c.b16 %v1100_v60, %v1099_v58  ;;  %v1083_v63 = vpop.f32.mrf.mxu2 }
 0x281   : > { %v1084_v1 = vadd.f32 %v2686_v48, %v1083_v63 }
 0x282   : > { %1172 = vrot.lane.b32.xlu0 %v1096_v61, %s2844_s18  ;;  %v1107_v2 = vsel %vm1102_vm8, %v1101_v62, 0 }
 0x283   : > { %v1091_v3 = vpack.c.bf16 %v1084_v1, %v1084_v1  ;;  %1116 = vmatpush.bf16.xpose.msra.mxu3 %v1107_v2 }
 0x285   : > { %v1150_v5 = vunpack.c.l.b16 %v1091_v3 }
 0x287   : > { %v3160_v6 = vpack.c.b16 %v1150_v5, %v1149_v4 }
 0x28a   : > { %2328 = vmatmul.msk.bf16.vlgmr.msra.gmra.mxu3 %vm1102_vm8, %v1096_v61 }
 0x28b   : > { %1163 = vmatpush.bf16.msrb.mxu3 %v3160_v6 }
 0x2f4   : > { %v1173_v23 = vpop.permute.xlu0 %1172 }
 0x30d   : > { %v1118_v7 = vpop.f32.mrf.mxu3 }
 0x30e   : > { %v1124_v8 = vsel %vm1123_vm9, %v1118_v7, -inf }
 0x30f   : > { %1125 = vmax.xlane.f32.xlu2 %v1124_v8 }
 0x315   : > { %v1120_v9 = vpop.f32.mrf.mxu3 }
 0x316   : > { %v1127_v10 = vsel %vm1123_vm9, %v1120_v9, -inf }
 0x317   : > { %1128 = vmax.xlane.f32.xlu2 %v1127_v10 }
 0x32f   : > { %1174 = vrot.lane.b32.xlu2 %v1101_v62, %s2844_s18 }
 0x337   : > { %1330 = vrot.lane.b32.xlu2 %v1101_v62, %s2845_s28 }
 0x33f   : > { %1328 = vrot.lane.b32.xlu2 %v1096_v61, %s2845_s28 }
 0x382   : > { %v1126_v11 = vpop.xlane.xlu2 %1125 }
 0x383   : > { %v1130_v12 = vsub.f32 %v1118_v7, %v1126_v11 }
 0x385   : > { %v1132_v13 = vmul.f32 1.442695, %v1130_v12 }
 0x387   : > { %2697 = vpow2.f32 %v1132_v13 }
 0x38a   : > { %v1129_v14 = vpop.xlane.xlu2 %1128 }
 0x38b   : > { %v1131_v15 = vsub.f32 %v1120_v9, %v1129_v14 }
 0x38d   : > { %v2698_v16 = vpop.eup %2697  ;;  %v1134_v17 = vmul.f32 1.442695, %v1131_v15 }
 0x38e   : > { %v1136_v18 = vsel %vm1123_vm9, %v2698_v16, 0.0 }
 0x38f   : > { %2699 = vpow2.f32 %v1134_v17  ;;  %1137 = vadd.xlane.f32.xlu0 %v1136_v18 }
 0x392   : > { %v1175_v19 = vpop.permute.xlu2 %1174 }
 0x393   : > { %v1180_v20 = vsel %vm1102_vm8, %v1175_v19, 0 }
 0x394   : > { %1189 = vmatpush.bf16.xpose.msra.mxu3 %v1180_v20 }
 0x395   : > { %v2700_v21 = vpop.eup %2699 }
 0x396   : > { %v1139_v22 = vsel %vm1123_vm9, %v2700_v21, 0.0 }
 0x397   : > { %1140 = vadd.xlane.f32.xlu1 %v1139_v22 }
 0x39a   : > { %v1331_v30 = vpop.permute.xlu2 %1330 }
 0x39b   : > { %v1336_v34 = vsel %vm1102_vm8, %v1331_v30, 0 }
 0x3a2   : > { %v1329_v38 = vpop.permute.xlu2 %1328 }
 0x3a3   : > { %1250 = vrot.lane.b32.xlu0 %v1096_v61, %s2846_s14 }
 0x3b0   : > { %1252 = vrot.lane.b32.xlu1 %v1101_v62, %s2846_s14 }
 0x402   : > { %v1138_v24 = vpop.xlane.xlu0 %1137 }
 0x403   : > { %2701 = vrcp.f32 %v1138_v24 }
 0x409   : > { %v2702_v26 = vpop.eup %2701 }
 0x40a   : > { %v1141_v25 = vpop.xlane.xlu1 %1140  ;;  %v1144_v28 = vmul.f32 %v2702_v26, %v2698_v16 }
 0x40b   : > { %2703 = vrcp.f32 %v1141_v25 }
 0x411   : > { %v2704_v27 = vpop.eup %2703 }
 0x412   : > { %v1145_v29 = vmul.f32 %v2704_v27, %v2700_v21 }
 0x414   : > { %v1146_v33 = vpack.c.bf16 %v1145_v29, %v1144_v28 }
 0x415   : > { %v1251_v37 = vpop.permute.xlu0 %1250 }
 0x416   : > { %2329 = vmatmul.msk.bf16.vlgmr.msrb.gmra.mxu3 %vm1123_vm9, %v1146_v33 }
 0x417   : > { %1345 = vmatpush.bf16.xpose.msrb.mxu3 %v1336_v34 }
 0x422   : > { %v1253_v35 = vpop.permute.xlu1 %1252 }
 0x423   : > { %v1258_v36 = vsel %vm1102_vm8, %v1253_v35, 0 }
 0x424   : > { %1267 = vmatpush.bf16.xpose.msrb.mxu2 %v1258_v36 }
 0x426   : > { %2330 = vmatmul.msk.bf16.vlgmr.msra.gmra.mxu3 %vm1102_vm8, %v1173_v23 }
 0x42b   : > { %2332 = vmatmul.msk.bf16.vlgmr.msrb.gmra.mxu2 %vm1102_vm8, %v1251_v37 }
 0x436   : > { %2334 = vmatmul.msk.bf16.vlgmr.msrb.gmra.mxu3 %vm1102_vm8, %v1329_v38 }
 0x499   : > { %v1165_v40 = vpop.f32.mrf.mxu3 }
 0x49a   : > { %1170 = vst.msk [vmem:[#allocation3] sm:$0xff] %vm1102_vm8, %v1165_v40 }
 0x4a1   : > { %v1167_v41 = vpop.f32.mrf.mxu3 }
 0x4a2   : > { %1171 = vst.msk [vmem:[#allocation3 + $0x8] sm:$0xff] %vm1102_vm8, %v1167_v41 }
 0x4a9   : > { %v1191_v42 = vpop.f32.mrf.mxu3 }
 0x4aa   : > { %v1196_v43 = vsel %vm1123_vm9, %v1191_v42, -inf }
 0x4ab   : > { %1197 = vmax.xlane.f32.xlu1 %v1196_v43 }
 0x4ae   : > { %v1269_v44 = vpop.f32.mrf.mxu2 }
 0x4af   : > { %v1274_v45 = vsel %vm1123_vm9, %v1269_v44, -inf }
 0x4b0   : > { %1275 = vmax.xlane.f32.xlu2 %v1274_v45 }
 0x4b1   : > { %v1193_v47 = vpop.f32.mrf.mxu3 }
 0x4b2   : > { %v1199_v48 = vsel %vm1123_vm9, %v1193_v47, -inf }
 0x4b3   : > { %1200 = vmax.xlane.f32.xlu0 %v1199_v48 }
 0x4b6   : > { %v1271_v49 = vpop.f32.mrf.mxu2 }
 0x4b7   : > { %v1277_v46 = vsel %vm1123_vm9, %v1271_v49, -inf }
 0x4b8   : > { %1278 = vmax.xlane.f32.xlu1 %v1277_v46 }
 0x4b9   : > { %v1347_v50 = vpop.f32.mrf.mxu3 }
 0x4ba   : > { %v1352_v51 = vsel %vm1123_vm9, %v1347_v50, -inf }
 0x4bb   : > { %1353 = vmax.xlane.f32.xlu0 %v1352_v51 }
 0x4c1   : > { %v1349_v52 = vpop.f32.mrf.mxu3 }
 0x4c2   : > { %v1355_v53 = vsel %vm1123_vm9, %v1349_v52, -inf }
 0x4c3   : > { %1356 = vmax.xlane.f32.xlu2 %v1355_v53  ;;  %v2570_v53 = vld [vmem:[%s3011_s22 + $0xf8] sm:$0xff] }
 0x4c4   : > { %1479 = vmatpush.bf16.msrb.mxu1 %v2570_v53  ;;  %v2576_v53 = vld [vmem:[%s3042_s4 + $0x24] sm:$0xf0] }
 0x4db   : > { %1219 = vrot.lane.b32.xlu2 %v3160_v6, %s2844_s18 }
 0x51e   : > { %v1198_v54 = vpop.xlane.xlu1 %1197 }
 0x51f   : > { %v1202_v57 = vsub.f32 %v1191_v42, %v1198_v54  ;;  %v2569_v54 = vld [vmem:[%s3011_s22 + $0xf0] sm:$0xff] }
 0x520   : > { %1480 = vmatpush.bf16.msrb.mxu1 %v2569_v54  ;;  %v2575_v54 = vld [vmem:[%s3042_s4 + $0x24] sm:$0xf] }
 0x521   : > { %v1204_v60 = vmul.f32 1.442695, %v1202_v57  ;;  %v2566_v57 = vld [vmem:[%s3011_s22 + $0xd8] sm:$0xff] }
 0x523   : > { %v1276_v55 = vpop.xlane.xlu2 %1275 }
 0x524   : > { %v1280_v56 = vsub.f32 %v1269_v44, %v1276_v55  ;;  %v2568_v55 = vld [vmem:[%s3011_s22 + $0xe8] sm:$0xff] }
 0x525   : > { %1481 = vmatpush.bf16.msrb.mxu1 %v2568_v55 }
 0x526   : > { %v1282_v58 = vmul.f32 1.442695, %v1280_v56  ;;  %v1201_v59 = vpop.xlane.xlu0 %1200  ;;  %v2567_v56 = vld [vmem:[%s3011_s22 + $0xe0] sm:$0xff] }
 0x527   : > { %v1203_v63 = vsub.f32 %v1193_v47, %v1201_v59  ;;  %v2565_v59 = vld [vmem:[%s3011_s22 + $0xd0] sm:$0xff] }
 0x528   : > { %2705 = vpow2.f32 %v1282_v58 }
 0x529   : > { %2707 = vpow2.f32 %v1204_v60  ;;  %v1206_v5 = vmul.f32 1.442695, %v1203_v63  ;;  %1482 = vmatpush.bf16.msrb.mxu1 %v2567_v56  ;;  %v2564_v60 = vld [vmem:[%s3011_s22 + $0xc8] sm:$0xff] }
 0x52a   : > { %v2407_v56 = vld [vmem:[%s3042_s4 + $0x28] sm:$0xf0] }
 0x52b   : > { %v1279_v61 = vpop.xlane.xlu1 %1278 }
 0x52c   : > { %v1281_v62 = vsub.f32 %v1271_v49, %v1279_v61  ;;  %v2563_v61 = vld [vmem:[%s3011_s22 + $0xc0] sm:$0xff]  ;;  %s3416_s22 = sld [smem:[#allocation23_spill]] (!%p2515_p1) }
 0x52d   : > { %1483 = vmatpush.bf16.msrb.mxu1 %v2566_v57  ;;  %v2410_v57 = vor.u32 %v2575_v54, %v2407_v56  ;;  %v2595_v54 = vld [vmem:[%s3047_s5 + $0x40] sm:$0xff] }
 0x52e   : > { %v2706_v0 = vpop.eup %2705  ;;  %v1284_v1 = vmul.f32 1.442695, %v1281_v62  ;;  %v1354_v2 = vpop.xlane.xlu0 %1353 }
 0x52f   : > { %v1358_v3 = vsub.f32 %v1347_v50, %v1354_v2  ;;  %v1286_v4 = vsel %vm1123_vm9, %v2706_v0, 0.0  ;;  %v2708_v8 = vpop.eup %2707 }
 0x530   : > { %2709 = vpow2.f32 %v1284_v1  ;;  %1287 = vadd.xlane.f32.xlu1 %v1286_v4  ;;  %v1208_v13 = vsel %vm1123_vm9, %v2708_v8, 0.0 }
 0x531   : > { %v1360_v7 = vmul.f32 1.442695, %v1358_v3  ;;  %2711 = vpow2.f32 %v1206_v5  ;;  %1484 = vmatpush.bf16.msrb.mxu1 %v2565_v59  ;;  %v2574_v59 = vld [vmem:[%s3042_s4 + $0x14] sm:$0xf0] }
 0x533   : > { %2713 = vpow2.f32 %v1360_v7  ;;  %v2687_v7 = vld [vmem:[%s3017_s30 + $0x3] ss:$0 sm:$0xff] }
 0x535   : > { %1485 = vmatpush.bf16.msrb.mxu1 %v2564_v60  ;;  %v2573_v60 = vld [vmem:[%s3042_s4 + $0x14] sm:$0xf] }
 0x536   : > { %v2710_v9 = vpop.eup %2709  ;;  %v1357_v10 = vpop.xlane.xlu2 %1356 }
 0x537   : > { %v1359_v11 = vsub.f32 %v1349_v52, %v1357_v10  ;;  %v1289_v12 = vsel %vm1123_vm9, %v2710_v9, 0.0  ;;  %v2712_v15 = vpop.eup %2711 }
 0x538   : > { %1290 = vadd.xlane.f32.xlu0 %v1289_v12  ;;  %1209 = vadd.xlane.f32.xlu1 %v1208_v13  ;;  %v1211_v18 = vsel %vm1123_vm9, %v2712_v15, 0.0 }
 0x539   : > { %v1362_v14 = vmul.f32 1.442695, %v1359_v11  ;;  %v2714_v16 = vpop.eup %2713  ;;  %1486 = vmatpush.bf16.msrb.mxu1 %v2563_v61 }
 0x53a   : > { %v1364_v19 = vsel %vm1123_vm9, %v2714_v16, 0.0 }
 0x53b   : > { %2715 = vpow2.f32 %v1362_v14 }
 0x53e   : > { %v1220_v17 = vpop.permute.xlu2 %1219 }
 0x53f   : > { %1232 = vmatpush.bf16.msrb.mxu0 %v1220_v17 }
 0x540   : > { %1212 = vadd.xlane.f32.xlu0 %v1211_v18  ;;  %1365 = vadd.xlane.f32.xlu1 %v1364_v19 }
 0x541   : > { %v2716_v20 = vpop.eup %2715 }
 0x542   : > { %v1367_v21 = vsel %vm1123_vm9, %v2716_v20, 0.0 }
 0x548   : > { %1368 = vadd.xlane.f32.xlu0 %v1367_v21  ;;  %v2586_v21 = vld [vmem:[%s3042_s4 + $0x74] sm:$0xf0] }
 0x559   : > { %1297 = vrot.lane.b32.xlu1 %v3160_v6, %s2846_s14 }
 0x55c   : > { %1375 = vrot.lane.b32.xlu0 %v3160_v6, %s2845_s28 }
 0x5a3   : > { %v1288_v22 = vpop.xlane.xlu1 %1287 }
 0x5ab   : > { %v1291_v23 = vpop.xlane.xlu0 %1290  ;;  %v1210_v24 = vpop.xlane.xlu1 %1209 }
 0x5ac   : > { %2717 = vrcp.f32 %v1210_v24  ;;  %v2447_v24 = vld [vmem:[%s3042_s4 + $0x78] sm:$0xf0] }
 0x5b2   : > { %v2718_v26 = vpop.eup %2717 }
 0x5b3   : > { %v1213_v25 = vpop.xlane.xlu0 %1212  ;;  %v1216_v28 = vmul.f32 %v2718_v26, %v2708_v8  ;;  %v1366_v34 = vpop.xlane.xlu1 %1365  ;;  %v2437_v26 = vld [vmem:[%s3042_s4 + $0x60] sm:$0xf] }
 0x5b4   : > { %2719 = vrcp.f32 %v1213_v25 }
 0x5b5   : > { %2721 = vrcp.f32 %v1291_v23 }
 0x5b6   : > { %2723 = vrcp.f32 %v1288_v22  ;;  %v2585_v22 = vld [vmem:[%s3042_s4 + $0x74] sm:$0xf] }
 0x5b7   : > { %v2450_v25 = vor.u32 %v2585_v22, %v2447_v24 }
 0x5b9   : > { %1666 = vmatpush.bf16.msra.mxu3 %v2450_v25 }
 0x5ba   : > { %v2720_v27 = vpop.eup %2719 }
 0x5bb   : > { %v1217_v29 = vmul.f32 %v2720_v27, %v2712_v15  ;;  %v1369_v33 = vpop.xlane.xlu0 %1368  ;;  %v2722_v6 = vpop.eup %2721  ;;  %v2584_v27 = vld [vmem:[%s3042_s4 + $0x64] sm:$0xf0] }
 0x5bc   : > { %2725 = vrcp.f32 %v1369_v33  ;;  %v2724_v35 = vpop.eup %2723  ;;  %v1295_v37 = vmul.f32 %v2722_v6, %v2710_v9  ;;  %v2582_v6 = vld [vmem:[%s3042_s4 + $0x54] sm:$0xf0] }
 0x5bd   : > { %v1218_v30 = vpack.c.bf16 %v1217_v29, %v1216_v28  ;;  %2727 = vrcp.f32 %v1366_v34  ;;  %v1294_v40 = vmul.f32 %v2724_v35, %v2706_v0  ;;  %v2583_v28 = vld [vmem:[%s3042_s4 + $0x64] sm:$0xf]  ;;  %v2438_v29 = vor.u32 %v2584_v27, %v2437_v26  ;;  %v2429_v34 = vld [vmem:[%s3042_s4 + $0x50] sm:$0xf]  ;;  %v2581_v35 = vld [vmem:[%s3042_s4 + $0x54] sm:$0xf] }
 0x5bf   : > { %2331 = vmatmul.msk.bf16.vlgmr.msrb.gmra.mxu0 %vm1123_vm9, %v1218_v30  ;;  %v1296_v43 = vpack.c.bf16 %v1295_v37, %v1294_v40  ;;  %v2439_v30 = vld [vmem:[%s3042_s4 + $0x68] sm:$0xf0]  ;;  %v2431_v37 = vld [vmem:[%s3042_s4 + $0x58] sm:$0xf0]  ;;  %v2421_v40 = vld [vmem:[%s3042_s4 + $0x40] sm:$0xf] }
 0x5c0   : > { %v2442_v33 = vor.u32 %v2583_v28, %v2439_v30  ;;  %v2688_v28 = vld [vmem:[%s3026_s24 + $0x1] ss:$0 sm:$0xff] }
 0x5c2   : > { %v2726_v36 = vpop.eup %2725  ;;  %1667 = vmatpush.bf16.msra.mxu3 %v2442_v33 }
 0x5c3   : > { %v2728_v38 = vpop.eup %2727  ;;  %v1373_v42 = vmul.f32 %v2726_v36, %v2716_v20  ;;  %v2445_v20 = vld [vmem:[%s3042_s4 + $0x70] sm:$0xf]  ;;  %v2430_v36 = vor.u32 %v2582_v6, %v2429_v34  ;;  %v2689_v6 = vld [vmem:[%s3032_s15 + $0x1] ss:$0 sm:$0xff] }
 0x5c4   : > { %v1372_v44 = vmul.f32 %v2728_v38, %v2714_v16  ;;  %v2446_v23 = vor.u32 %v2586_v21, %v2445_v20  ;;  %v2434_v38 = vor.u32 %v2581_v35, %v2431_v37 }
 0x5c6   : > { %v1374_v47 = vpack.c.bf16 %v1373_v42, %v1372_v44  ;;  %1668 = vmatpush.bf16.msra.mxu3 %v2434_v38  ;;  %v2579_v42 = vld [vmem:[%s3042_s4 + $0x44] sm:$0xf]  ;;  %v2423_v44 = vld [vmem:[%s3042_s4 + $0x48] sm:$0xf0] }
 0x5cb   : > { %v1298_v41 = vpop.permute.xlu1 %1297 }
 0x5cc   : > { %1310 = vmatpush.bf16.msra.mxu2 %v1298_v41  ;;  %v2580_v41 = vld [vmem:[%s3042_s4 + $0x44] sm:$0xf0] }
 0x5ce   : > { %v1376_v45 = vpop.permute.xlu0 %1375 }
 0x5cf   : > { %2333 = vmatmul.msk.bf16.vlgmr.msra.gmra.mxu2 %vm1123_vm9, %v1296_v43  ;;  %1388 = vmatpush.bf16.msra.mxu0 %v1376_v45  ;;  %v2422_v43 = vor.u32 %v2580_v41, %v2421_v40  ;;  %v2426_v45 = vor.u32 %v2579_v42, %v2423_v44  ;;  %v2602_v40 = vld [vmem:[%s3047_s5 + $0x78] sm:$0xff]  ;;  %v2593_v41 = vld [vmem:[%s3047_s5 + $0x30] sm:$0xff]  ;;  %v2592_v42 = vld [vmem:[%s3047_s5 + $0x28] sm:$0xff] }
 0x5d0   : > { %1652 = vmatpush.bf16.msrb.mxu2 %v2446_v23  ;;  %1864 = vmatpush.bf16.msra.mxu1 %v2602_v40  ;;  %v2591_v44 = vld [vmem:[%s3047_s5 + $0x20] sm:$0xff] }
 0x5d1   : > { %1669 = vmatpush.bf16.msra.mxu3 %v2426_v45  ;;  %v2599_v45 = vld [vmem:[%s3047_s5 + $0x60] sm:$0xff] }
 0x5d2   : > { %2335 = vmatmul.msk.bf16.vlgmr.msra.gmra.mxu0 %vm1123_vm9, %v1374_v47  ;;  %v2413_v47 = vld [vmem:[%s3042_s4 + $0x30] sm:$0xf] }
 0x5d4   : > { %1653 = vmatpush.bf16.msrb.mxu2 %v2438_v29 }
 0x5d8   : > { %1654 = vmatpush.bf16.msrb.mxu2 %v2430_v36 }
 0x5dc   : > { %1655 = vmatpush.bf16.msrb.mxu2 %v2422_v43  ;;  %v2600_v43 = vld [vmem:[%s3047_s5 + $0x68] sm:$0xff] }
 0x63c   : > { %v1234_v48 = vpop.f32.mrf.mxu0 }
 0x644   : > { %v1236_v49 = vpop.f32.mrf.mxu0 }
 0x64f   : > { %v1390_v46 = vpop.f32.mrf.mxu0 }
 0x650   : > { %1397 = vrot.lane.b32.xlu1 %v1390_v46, %s2844_s18 }
 0x652   : > { %v1312_v50 = vpop.f32.mrf.mxu2 }
 0x653   : > { %1319 = vrot.lane.b32.xlu2 %v1312_v50, %s2846_s14  ;;  %v2415_v50 = vld [vmem:[%s3042_s4 + $0x38] sm:$0xf0] }
 0x657   : > { %v1392_v52 = vpop.f32.mrf.mxu0 }
 0x65a   : > { %v1314_v51 = vpop.f32.mrf.mxu2 }
 0x65b   : > { %1321 = vrot.lane.b32.xlu0 %v1314_v51, %s2846_s14  ;;  %1241 = vrot.lane.b32.xlu2 %v1234_v48, %s2845_s28  ;;  %v2578_v48 = vld [vmem:[%s3042_s4 + $0x34] sm:$0xf0] }
 0x65c   : > { %v2414_v46 = vor.u32 %v2578_v48, %v2413_v47  ;;  %v2590_v47 = vld [vmem:[%s3047_s5 + $0x18] sm:$0xff] }
 0x65d   : > { %v2598_v48 = vld [vmem:[%s3047_s5 + $0x58] sm:$0xff] }
 0x65e   : > { %1656 = vmatpush.bf16.msrb.mxu2 %v2414_v46  ;;  %v2597_v46 = vld [vmem:[%s3047_s5 + $0x50] sm:$0xff] }
 0x663   : > { %1243 = vrot.lane.b32.xlu2 %v1236_v49, %s2845_s28  ;;  %v2577_v49 = vld [vmem:[%s3042_s4 + $0x34] sm:$0xf] }
 0x664   : > { %v2418_v51 = vor.u32 %v2577_v49, %v2415_v50  ;;  %v2589_v49 = vld [vmem:[%s3047_s5 + $0x10] sm:$0xff]  ;;  %v2588_v50 = vld [vmem:[%s3047_s5 + $0x8] sm:$0xff] }
 0x666   : > { %1670 = vmatpush.bf16.msra.mxu3 %v2418_v51  ;;  %v2596_v51 = vld [vmem:[%s3047_s5 + $0x48] sm:$0xff] }
 0x66a   : > { %1671 = vmatpush.bf16.msra.mxu3 %v2410_v57 }
 0x66b   : > { %1399 = vrot.lane.b32.xlu2 %v1392_v52, %s2844_s18  ;;  %v2405_v52 = vld [vmem:[%s3042_s4 + $0x20] sm:$0xf] }
 0x66c   : > { %v2406_v55 = vor.u32 %v2576_v53, %v2405_v52  ;;  %v1566_v52 = vld [vmem:[%s611_s20] sm:$0x3]  ;;  %s3417_s20 = sld [smem:[#allocation24_spill]] (!%p2515_p1) }
 0x66d   : > { %v2587_v53 = vld [vmem:[%s3047_s5] sm:$0xff]  ;;  %v1569_v56 = vperm.slane %v1566_v52, 1 }
 0x66e   : > { %1657 = vmatpush.bf16.msrb.mxu2 %v2406_v55  ;;  %v1568_v55 = vperm.slane %v1566_v52, 0 }
 0x6ad   : > { %v1320_v58 = vpop.permute.xlu2 %1319 }
 0x6b5   : > { %v1242_v62 = vpop.permute.xlu2 %1241 }
 0x6b6   : > { %1248 = vst.msk [vmem:[#allocation3] sm:$0xff] %vm1247_vm10, %v1242_v62  ;;  %v2399_v62 = vld [vmem:[%s3042_s4 + $0x18] sm:$0xf0] }
 0x6b7   : > { %1326 = vst.msk [vmem:[#allocation3] sm:$0xff] %vm1325_vm11, %v1320_v58  ;;  %v2397_v58 = vld [vmem:[%s3042_s4 + $0x10] sm:$0xf] }
 0x6b8   : > { %v2398_v61 = vor.u32 %v2574_v59, %v2397_v58 }
 0x6ba   : > { %1658 = vmatpush.bf16.msrb.mxu2 %v2398_v61 }
 0x6bd   : > { %v1244_v63 = vpop.permute.xlu2 %1243 }
 0x6be   : > { %1249 = vst.msk [vmem:[#allocation3 + $0x8] sm:$0xff] %vm1247_vm10, %v1244_v63  ;;  %v2389_v63 = vld [vmem:[%s3042_s4] sm:$0xf] }
 0x6c2   : > { %v1398_v0 = vpop.permute.xlu1 %1397 }
 0x6c3   : > { %1404 = vst.msk [vmem:[#allocation3] sm:$0xff] %vm1403_vm12, %v1398_v0  ;;  %v2572_v0 = vld [vmem:[%s3042_s4 + $0x4] sm:$0xf0] }
 0x6c5   : > { %v1400_v2 = vpop.permute.xlu2 %1399 }
 0x6ca   : > { %v1406_v3 = vld [vmem:[#allocation3] sm:$0xff] }
 0x6cd   : > { %v1322_v1 = vpop.permute.xlu0 %1321 }
 0x6ce   : > { %1327 = vst.msk [vmem:[#allocation3 + $0x8] sm:$0xff] %vm1325_vm11, %v1322_v1 }
 0x6cf   : > { %1405 = vst.msk [vmem:[#allocation3 + $0x8] sm:$0xff] %vm1403_vm12, %v1400_v2  ;;  %v2402_v2 = vor.u32 %v2573_v60, %v2399_v62 }
 0x6d1   : > { %1672 = vmatpush.bf16.msra.mxu3 %v2402_v2 }
 0x6d6   : > { %v1407_v4 = vld [vmem:[#allocation3 + $0x8] sm:$0xff] }
 0x6d7   : > { %v1408_v5 = vpack.c.bf16 %v1407_v4, %v1406_v3  ;;  %v2571_v3 = vld [vmem:[%s3042_s4 + $0x4] sm:$0xf]  ;;  %v2391_v4 = vld [vmem:[%s3042_s4 + $0x8] sm:$0xf0] }
 0x6d9   : > { %1487 = vmatmul.bf16.vlgmr.msrb.gmra.mxu1 %v1408_v5 }
 0x756   : > { %v1488_v8 = vpop.f32.mrf.mxu1 }
 0x757   : > { %v1489_v9 = vadd.f32 %v2687_v7, %v1488_v8  ;;  %v2394_v8 = vor.u32 %v2571_v3, %v2391_v4 }
 0x759   : > { %v3219_v10 = vadd.f32 %v1489_v9, %v3105_v31  ;;  %1673 = vmatpush.bf16.msra.mxu3 %v2394_v8 }
 0x75b   : > { %1499 = vadd.xlane.f32.xlu0 %v3219_v10 }
 0x75e   : > { %v1490_v11 = vpop.f32.mrf.mxu1 }
 0x75f   : > { %v1491_v12 = vadd.f32 %v2687_v7, %v1490_v11  ;;  %v2390_v7 = vor.u32 %v2572_v0, %v2389_v63 }
 0x761   : > { %v3223_v13 = vadd.f32 %v1491_v12, %v3108_v32  ;;  %1659 = vmatpush.bf16.msrb.mxu2 %v2390_v7 }
 0x763   : > { %1501 = vadd.xlane.f32.xlu1 %v3223_v13 }
 0x7ce   : > { %v1500_v14 = vpop.xlane.xlu0 %1499 }
 0x7cf   : > { %v1503_v15 = vmul.f32 %v1500_v14, %v3111_v39 }
 0x7d1   : > { %v3228_v16 = vsub.f32 %v3219_v10, %v1503_v15 }
 0x7d3   : > { %v1507_v31 = vmul.f32 %v3228_v16, %v3228_v16 }
 0x7d5   : > { %1509 = vadd.xlane.f32.xlu2 %v1507_v31 }
 0x7d6   : > { %v1502_v17 = vpop.xlane.xlu1 %1501 }
 0x7d7   : > { %v1504_v32 = vmul.f32 %v1502_v17, %v3111_v39 }
 0x7d9   : > { %v3234_v18 = vsub.f32 %v3223_v13, %v1504_v32 }
 0x7db   : > { %v1508_v19 = vmul.f32 %v3234_v18, %v3234_v18 }
 0x7dd   : > { %1511 = vadd.xlane.f32.xlu0 %v1508_v19 }
 0x848   : > { %v1510_v1 = vpop.xlane.xlu2 %1509 }
 0x849   : > { %v1513_v5 = vmul.f32 %v1510_v1, %v3111_v39 }
 0x84b   : > { %v1515_v9 = vadd.f32 1e-06, %v1513_v5 }
 0x84d   : > { %2729 = vrsqrt.f32 %v1515_v9  ;;  %vm1523_vm14 = vweird.f32 %v1515_v9 }
 0x850   : > { %v1512_v11 = vpop.xlane.xlu0 %1511 }
 0x851   : > { %v1514_v12 = vmul.f32 %v1512_v11, %v3111_v39 }
 0x853   : > { %v2730_v14 = vpop.eup %2729  ;;  %v1516_v15 = vadd.f32 1e-06, %v1514_v12 }
 0x854   : > { %v1518_v31 = vmul.f32 %v2730_v14, %v1515_v9  ;;  %vm1524_vm13 = vweird.f32 %v2730_v14 }
 0x855   : > { %2731 = vrsqrt.f32 %v1516_v15  ;;  %vm1525_vm15 = vmor %vm1523_vm14, %vm1524_vm13  ;;  %vm1533_vm1 = vweird.f32 %v1516_v15 }
 0x856   : > { %v1519_v17 = vmul.f32 %v2730_v14, %v1518_v31 }
 0x858   : > { %v1520_v32 = vmul.f32 0.5, %v1519_v17 }
 0x85a   : > { %v1521_v19 = vsub.f32 1.5, %v1520_v32 }
 0x85b   : > { %v2732_v20 = vpop.eup %2731 }
 0x85c   : > { %v1522_v21 = vmul.f32 %v2730_v14, %v1521_v19  ;;  %v1528_v22 = vmul.f32 %v2732_v20, %v1516_v15  ;;  %vm1534_vm0 = vweird.f32 %v2732_v20 }
 0x85d   : > { %vm1535_vm2 = vmor %vm1533_vm1, %vm1534_vm0 }
 0x85e   : > { %v1529_v23 = vmul.f32 %v2732_v20, %v1528_v22  ;;  %v1526_v24 = vsel %vm1525_vm15, %v2730_v14, %v1522_v21 }
 0x85f   : > { %v1537_v27 = vmul.f32 %v1526_v24, %v3228_v16  ;;  %v2594_v16 = vld [vmem:[%s3047_s5 + $0x38] sm:$0xff] }
 0x860   : > { %v1530_v25 = vmul.f32 0.5, %v1529_v23  ;;  %1850 = vmatpush.bf16.msrb.mxu0 %v2594_v16 }
 0x861   : > { %v1542_v34 = vmul.f32 %v2688_v28, %v1537_v27 }
 0x862   : > { %v1531_v26 = vsub.f32 1.5, %v1530_v25 }
 0x863   : > { %v1547_v36 = vadd.f32 %v2689_v6, %v1542_v34 }
 0x864   : > { %v1532_v29 = vmul.f32 %v2732_v20, %v1531_v26  ;;  %1851 = vmatpush.bf16.msrb.mxu0 %v2593_v41 }
 0x866   : > { %v1536_v30 = vsel %vm1535_vm2, %v2732_v20, %v1532_v29 }
 0x867   : > { %v1538_v33 = vmul.f32 %v1536_v30, %v3234_v18  ;;  %v2601_v18 = vld [vmem:[%s3047_s5 + $0x70] sm:$0xff] }
 0x868   : > { %1865 = vmatpush.bf16.msra.mxu1 %v2601_v18  ;;  %1852 = vmatpush.bf16.msrb.mxu0 %v2592_v42  ;;  %v2690_v42 = vld [vmem:[%s619_s27] ss:$0 sm:$0xff] }
 0x869   : > { %v1543_v35 = vmul.f32 %v2688_v28, %v1538_v33 }
 0x86b   : > { %v1548_v37 = vadd.f32 %v2689_v6, %v1543_v35 }
 0x86c   : > { %1866 = vmatpush.bf16.msra.mxu1 %v2600_v43  ;;  %1853 = vmatpush.bf16.msrb.mxu0 %v2591_v44 }
 0x86d   : > { %v1549_v38 = vpack.c.bf16 %v1548_v37, %v1547_v36 }
 0x86f   : > { %1660 = vmatmul.bf16.vlgmr.msrb.gmra.mxu2 %v1549_v38  ;;  %1674 = vmatmul.bf16.vlgmr.msra.gmra.mxu3 %v1549_v38 }
 0x870   : > { %1867 = vmatpush.bf16.msra.mxu1 %v2599_v45  ;;  %1854 = vmatpush.bf16.msrb.mxu0 %v2590_v47 }
 0x874   : > { %1868 = vmatpush.bf16.msra.mxu1 %v2598_v48  ;;  %1855 = vmatpush.bf16.msrb.mxu0 %v2589_v49 }
 0x878   : > { %1869 = vmatpush.bf16.msra.mxu1 %v2597_v46  ;;  %1856 = vmatpush.bf16.msrb.mxu0 %v2588_v50 }
 0x87c   : > { %1870 = vmatpush.bf16.msra.mxu1 %v2596_v51  ;;  %1857 = vmatpush.bf16.msrb.mxu0 %v2587_v53 }
 0x880   : > { %1871 = vmatpush.bf16.msra.mxu1 %v2595_v54 }
 0x8f2   : > { %v1661_v57 = vpop.f32.mrf.mxu2  ;;  %v1675_v58 = vpop.f32.mrf.mxu3 }
 0x8f3   : > { %v1662_v59 = vadd.f32 %v1661_v57, %v1568_v55  ;;  %v1676_v60 = vadd.f32 %v1675_v58, %v1569_v56 }
 0x8f5   : > { %v1684_v61 = vmul.f32 0.044715, %v1662_v59  ;;  %v1685_v62 = vmul.f32 0.044715, %v1676_v60  ;;  %v1680_v30 = vmul.f32 0.5, %v1662_v59  ;;  %v1681_v6 = vmul.f32 0.5, %v1676_v60 }
 0x8f7   : > { %v1688_v63 = vmul.f32 %v1684_v61, %v1662_v59  ;;  %v1689_v0 = vmul.f32 %v1685_v62, %v1676_v60 }
 0x8f9   : > { %v1692_v1 = vmul.f32 %v1688_v63, %v1662_v59  ;;  %v1693_v2 = vmul.f32 %v1689_v0, %v1676_v60 }
 0x8fa   : > { %v1663_v3 = vpop.f32.mrf.mxu2  ;;  %v1677_v4 = vpop.f32.mrf.mxu3 }
 0x8fb   : > { %v1696_v5 = vadd.f32 %v1692_v1, %v1662_v59  ;;  %v1664_v7 = vadd.f32 %v1663_v3, %v1568_v55  ;;  %v1678_v8 = vadd.f32 %v1677_v4, %v1569_v56  ;;  %v1697_v9 = vadd.f32 %v1693_v2, %v1676_v60 }
 0x8fd   : > { %v1686_v11 = vmul.f32 0.044715, %v1664_v7  ;;  %v1687_v12 = vmul.f32 0.044715, %v1678_v8  ;;  %v1700_v14 = vmul.f32 0.7978846, %v1696_v5 }
 0x8fe   : > { %v1701_v31 = vmul.f32 0.7978846, %v1697_v9  ;;  %v1682_v33 = vmul.f32 0.5, %v1664_v7  ;;  %v1683_v35 = vmul.f32 0.5, %v1678_v8 }
 0x8ff   : > { %v1690_v15 = vmul.f32 %v1686_v11, %v1664_v7  ;;  %v1691_v17 = vmul.f32 %v1687_v12, %v1678_v8  ;;  %2733 = vtanh.f32 %v1700_v14 }
 0x900   : > { %2735 = vtanh.f32 %v1701_v31 }
 0x901   : > { %v1694_v32 = vmul.f32 %v1690_v15, %v1664_v7  ;;  %v1695_v19 = vmul.f32 %v1691_v17, %v1678_v8 }
 0x903   : > { %v1698_v20 = vadd.f32 %v1694_v32, %v1664_v7  ;;  %v1699_v21 = vadd.f32 %v1695_v19, %v1678_v8 }
 0x905   : > { %v1702_v22 = vmul.f32 0.7978846, %v1698_v20  ;;  %v1703_v23 = vmul.f32 0.7978846, %v1699_v21  ;;  %v2734_v24 = vpop.eup %2733 }
 0x906   : > { %v2736_v25 = vpop.eup %2735  ;;  %v1708_v26 = vadd.f32 1.0, %v2734_v24 }
 0x907   : > { %2737 = vtanh.f32 %v1702_v22  ;;  %v1709_v28 = vadd.f32 1.0, %v2736_v25 }
 0x908   : > { %2739 = vtanh.f32 %v1703_v23  ;;  %v1712_v37 = vmul.f32 %v1708_v26, %v1680_v30 }
 0x909   : > { %v1713_v16 = vmul.f32 %v1709_v28, %v1681_v6 }
 0x90d   : > { %v2738_v27 = vpop.eup %2737 }
 0x90e   : > { %v2740_v29 = vpop.eup %2739  ;;  %v1710_v34 = vadd.f32 1.0, %v2738_v27 }
 0x90f   : > { %v1711_v36 = vadd.f32 1.0, %v2740_v29 }
 0x910   : > { %v1714_v38 = vmul.f32 %v1710_v34, %v1682_v33 }
 0x911   : > { %v1715_v40 = vmul.f32 %v1711_v36, %v1683_v35 }
 0x912   : > { %v1716_v41 = vpack.c.bf16 %v1714_v38, %v1712_v37 }
 0x913   : > { %v1717_v18 = vpack.c.bf16 %v1715_v40, %v1713_v16 }
 0x914   : > { %1858 = vmatmul.bf16.vlgmr.msrb.gmra.mxu0 %v1716_v41 }
 0x915   : > { %1872 = vmatmul.bf16.vlgmr.msra.gmra.mxu1 %v1717_v18 }
 0x991   : > { %v1859_v43 = vpop.f32.mrf.mxu0 }
 0x992   : > { %v1860_v44 = vadd.f32 %v2690_v42, %v1859_v43  ;;  %v1873_v45 = vpop.f32.mrf.mxu1 }
 0x994   : > { %v1874_v47 = vadd.f32 %v1873_v45, %v1860_v44 }
 0x996   : > { %v1878_v48 = vadd.f32 %v1874_v47, %v3219_v10 }
 0x998   : > { %1880 = vst [vmem:[#allocation2] sm:$0xff] %v1878_v48 }
 0x999   : > { %v1861_v49 = vpop.f32.mrf.mxu0 }
 0x99a   : > { %v1862_v46 = vadd.f32 %v2690_v42, %v1861_v49  ;;  %v1875_v50 = vpop.f32.mrf.mxu1 }
 0x99c   : > { %v1876_v51 = vadd.f32 %v1875_v50, %v1862_v46  ;;  %1885 = sbr.rel (%p2515_p1) target bundleno = 2740 (0xab4), region = 84 }
 0x99e   : > { %v1879_v52 = vadd.f32 %v1876_v51, %v3223_v13 }
 0x9a0   : > { %1881 = vst [vmem:[#allocation2 + $0x8] sm:$0xff] %v1879_v52 }
 0x9a1   : > { %1888 = vadd.xlane.f32.xlu0 %v1878_v48  ;;  %v2741_v11 = vld [vmem:[%s3416_s22] ss:$0 sm:$0xff] }
 0x9a2   : > { %v2742_v15 = vld [vmem:[%s3417_s20] ss:$0 sm:$0xff] }
 0x9a9   : > { %1890 = vadd.xlane.f32.xlu0 %v1879_v52 }
 0xa14   : > { %v1889_v53 = vpop.xlane.xlu0 %1888 }
 0xa15   : > { %v1892_v54 = vmul.f32 %v1889_v53, %v3111_v39 }
 0xa17   : > { %v1894_v55 = vsub.f32 %v1878_v48, %v1892_v54 }
 0xa19   : > { %v1896_v56 = vmul.f32 %v1894_v55, %v1894_v55 }
 0xa1b   : > { %1898 = vadd.xlane.f32.xlu1 %v1896_v56 }
 0xa1c   : > { %v1891_v10 = vpop.xlane.xlu0 %1890 }
 0xa1d   : > { %v1893_v57 = vmul.f32 %v1891_v10, %v3111_v39 }
 0xa1f   : > { %v1895_v58 = vsub.f32 %v1879_v52, %v1893_v57 }
 0xa21   : > { %v1897_v59 = vmul.f32 %v1895_v58, %v1895_v58 }
 0xa23   : > { %1900 = vadd.xlane.f32.xlu1 %v1897_v59 }
 0xa8e   : > { %v1899_v60 = vpop.xlane.xlu1 %1898 }
 0xa8f   : > { %v1902_v13 = vmul.f32 %v1899_v60, %v3111_v39 }
 0xa91   : > { %v1904_v61 = vadd.f32 1e-06, %v1902_v13 }
 0xa93   : > { %2743 = vrsqrt.f32 %v1904_v61  ;;  %vm1912_vm4 = vweird.f32 %v1904_v61 }
 0xa96   : > { %v1901_v62 = vpop.xlane.xlu1 %1900 }
 0xa97   : > { %v1903_v63 = vmul.f32 %v1901_v62, %v3111_v39 }
 0xa99   : > { %v2744_v0 = vpop.eup %2743  ;;  %v1905_v1 = vadd.f32 1e-06, %v1903_v63 }
 0xa9a   : > { %v1907_v2 = vmul.f32 %v2744_v0, %v1904_v61  ;;  %vm1913_vm3 = vweird.f32 %v2744_v0 }
 0xa9b   : > { %2745 = vrsqrt.f32 %v1905_v1  ;;  %vm1914_vm5 = vmor %vm1912_vm4, %vm1913_vm3  ;;  %vm1922_vm7 = vweird.f32 %v1905_v1 }
 0xa9c   : > { %v1908_v3 = vmul.f32 %v2744_v0, %v1907_v2 }
 0xa9e   : > { %v1909_v4 = vmul.f32 0.5, %v1908_v3 }
 0xaa0   : > { %v1910_v5 = vsub.f32 1.5, %v1909_v4 }
 0xaa1   : > { %v2746_v7 = vpop.eup %2745 }
 0xaa2   : > { %v1911_v8 = vmul.f32 %v2744_v0, %v1910_v5  ;;  %v1917_v9 = vmul.f32 %v2746_v7, %v1905_v1  ;;  %vm1923_vm6 = vweird.f32 %v2746_v7 }
 0xaa3   : > { %vm1924_vm8 = vmor %vm1922_vm7, %vm1923_vm6 }
 0xaa4   : > { %v1915_v12 = vsel %vm1914_vm5, %v2744_v0, %v1911_v8  ;;  %v1918_v39 = vmul.f32 %v2746_v7, %v1917_v9 }
 0xaa5   : > { %v1926_v14 = vmul.f32 %v1915_v12, %v1894_v55 }
 0xaa6   : > { %v1919_v31 = vmul.f32 0.5, %v1918_v39 }
 0xaa7   : > { %v1931_v17 = vmul.f32 %v2741_v11, %v1926_v14 }
 0xaa8   : > { %v1920_v32 = vsub.f32 1.5, %v1919_v31 }
 0xaa9   : > { %v1936_v19 = vadd.f32 %v2742_v15, %v1931_v17 }
 0xaaa   : > { %v1921_v20 = vmul.f32 %v2746_v7, %v1920_v32 }
 0xaab   : > { %1938 = vst [vmem:[%s3053_s29] sm:$0xff] %v1936_v19 }
 0xaac   : > { %v1925_v21 = vsel %vm1924_vm8, %v2746_v7, %v1921_v20 }
 0xaad   : > { %v1927_v22 = vmul.f32 %v1925_v21, %v1895_v58 }
 0xaaf   : > { %v1932_v23 = vmul.f32 %v2741_v11, %v1927_v22 }
 0xab1   : > { %v1937_v24 = vadd.f32 %v2742_v15, %v1932_v23 }
 0xab3   : > { %1939 = vst [vmem:[%s3053_s29 + $0x8] sm:$0xff] %v1937_v24 }
 0xab4 PF: > { %s3418_s27 = sld [smem:[#allocation10_spill]]  ;;  %s1953_s23 = sshll.u32 %s3053_s29, 4  ;;  %s1954_s23 = int_to_ptr.vmem [resolvable:$true] %s1953_s23 }
 0xab5   : > { %s3419_s0 = sld [smem:[#allocation8_spill]] }
 0xab6   : > { %s3421_s12 = sld [smem:[#allocation25_spill]] }
 0xaba   : > { %s2603_s21 = sshll.u32 %s3418_s27, 4 }
 0xabb   : > { %s3422_s28 = sand.u32 1, %s3419_s0  }
 0xabc   : > { %s1952_s19 = scalar_lea.hbm %s3421_s12, %s2603_s21  ;;  %s1941_s14 = scalar_lea.sflag [#allocation5], %s3422_s28 }
 0xabd   : > { %s1955_s18 = sshll.u32 %s1952_s19, 4  ;;  %s2767_s16 = scalar_lea.hbm %s3421_s12, 32  ;;  %s1956_s18 = int_to_ptr.hbm [resolvable:$true] %s1955_s18 }
 0xabe   : > { %s2761_s4 = sshra.s32 %s1956_s18, 4  ;;  %s2762_s4 = int_to_ptr.hbm [resolvable:$true] %s2761_s4 }
 0xabf   : > { %s2763_s30 = scalar_lea.hbm %s2762_s4, 16  ;;  %p2768_p6 = scmp.lt.s32.totalorder %s2762_s4, %s3421_s12 }
 0xac0   : > { %p2764_p2 = scmp.ne.s32.totalorder %s2762_s4, %s2763_s30  ;;  %p2769_p7 = scmp.lt.s32.totalorder %s2767_s16, %s2763_s30 }
 0xac2   : > { %p2765_p4 = pnand %p2764_p2, %p2973_p3  ;;  %p2770_p8 = por %p2769_p7, %p2768_p6 }
 0xac4   : > { %p2766_p5 = pneg %p2765_p4 }
 0xac6   : > { %p2771_p10 = pnand %p2770_p8, %p2766_p5 }
 0xac8   : > { %2774 = shalt.err (!%p2771_p10)
}
 0xac9   : > { %s2847_s29 = smov 128   ;;  %s2848_s24 = smov 8  }
 0xaca   : > { %2604 = dma.vmem_to_hbm [thread:$0]  (%p2973_p3), %s1954_s23, 256, %s1956_s18, %s1941_s14, %s2847_s29, %s2847_s29, %s2848_s24  }
 0xacb PF: > { %s3423_s15 = sld [smem:[#allocation13_spill]] }
 0xacc   : > { %s3424_s20 = sld [smem:[#allocation7_spill]] }
 0xad1   : > { %p2610_p11 = scmp.ge.s32.totalorder %s3423_s15, 2 }
 0xad2   : > { %s1970_s0 = sand.u32 1, %s3424_s20  }
 0xad3   : > { %p2607_p12 = pnand %p2610_p11, %p2983_p9  ;;  %s1971_s21 = scalar_lea.sflag [#allocation5], %s1970_s0 }
 0xad5   : > { %p2608_p13 = pneg %p2607_p12 }
 0xad7   : > { %2808 = dma.done.wait (%p2608_p13), %s1971_s21, 256  }
 0xad8   : > { %2810 = vsyncadd (%p2608_p13), %s1971_s21, 4294967040  ;;  %s27_s20 = sadd.s32 1, %s3423_s15   ;;  %s3426_s29 = sld [smem:[#allocation8_spill]] }
 0xad9   : > { %p24_p0 = scmp.ge.s32.totalorder %s27_s20, 6   ;;  %s3427_s30 = sld [smem:[#allocation9_spill]] }
 0xada   : > { %s3428_s15 = sld [smem:[#allocation18_spill]] }
 0xadb   : > { %s3429_s16 = sld [smem:[#allocation11_spill]]  ;;  %26 = sbr.rel (!%p24_p0) target bundleno = 13 (0xd), region = 151 }
 0xadc   : > { %s3430_s17 = sld [smem:[#allocation12_spill]] }
 0xadd   : > { %s3431_s18 = sld [smem:[#allocation14_spill]] }
 0xade   : > { %s3432_s19 = sld [smem:[#allocation16_spill]] }
 0xae0   :  { %1977 = vsyncpa [#allocation5], 1 }
 0xae1   :  { %1979 = vsyncpa [#allocation5 + $0x1], 1 }

</bundles_post_ra>
